<compile_context>
chip_gen: v7x
topology: tpu7x:2x2x1
jax: 0.10.0
libtpu: 0.0.40
codegen_flags: <defaults>
</compile_context>

<pallas_src>
import jax
import jax.numpy as jnp
from jax import lax
from jax.experimental import pallas as pl
from jax.experimental.pallas import tpu as pltpu
import numpy as np


def gru_linear_kernel(x_ref, wih_ref, bcomb_ref, whr_ref, whz_ref, whn_ref,
                      bhn_ref, wout_ref, out_ref,
                      gir_s, giz_s, gin_s, h_s):
    B, S, E = x_ref.shape
    H = whr_ref.shape[0]
    R = out_ref.shape[2]

    # ---------- hoisted input projection (one matmul, biases folded) ----------
    # rows are batch-major flat: row = b*S + t  (free relayout of (B,S,E))
    xflat = x_ref[...].reshape(B * S, E)                                  # (B*S, E)
    gi = jnp.dot(xflat, wih_ref[...],
                 preferred_element_type=jnp.float32) + bcomb_ref[...]     # (B*S, 3H)
    # Split per gate once (off the serial critical path) into VMEM scratch.
    gir_s[...] = gi[:, :H].reshape(B, S, H)
    giz_s[...] = gi[:, H:2 * H].reshape(B, S, H)
    gin_s[...] = gi[:, 2 * H:].reshape(B, S, H)

    whr = whr_ref[...]                                                    # (H, H)
    whz = whz_ref[...]                                                    # (H, H)
    whn = whn_ref[...]                                                    # (H, H)
    bhn = jnp.broadcast_to(bhn_ref[...], (B, H))                          # hoisted bcast
    wout = wout_ref[...]                                                  # (H, R)

    # ---------- serial recurrence, fully unrolled (S static & small) ----------
    h = jnp.zeros((B, H), dtype=jnp.float32)
    for t in range(S):
        gh_r = jnp.dot(h, whr, preferred_element_type=jnp.float32)
        gh_z = jnp.dot(h, whz, preferred_element_type=jnp.float32)
        gh_n = jnp.dot(h, whn, preferred_element_type=jnp.float32) + bhn
        r = jax.nn.sigmoid(gir_s[:, t, :] + gh_r)
        z = jax.nn.sigmoid(giz_s[:, t, :] + gh_z)
        n = jnp.tanh(gin_s[:, t, :] + r * gh_n)
        h = (1.0 - z) * n + z * h
        h_s[:, t, :] = h

    # ---------- deferred output projection: one matmul + one store ----------
    hall = h_s[...].reshape(B * S, H)                                     # (B*S, H)
    out = jnp.dot(hall, wout, preferred_element_type=jnp.float32)         # (B*S, R)
    out_ref[...] = out.reshape(B, S, R).astype(out_ref.dtype)


def net_forward(x, w_ih, w_hh, b_ih, b_hh, w_out):
    """x: (B, S, E) float32. Returns (B, S, R), matching PyTorch Net.forward.

    PyTorch GRU params: w_ih (3H, E), w_hh (3H, H), b_ih/b_hh (3H,), gate order [r, z, n].
    Linear: w_out (R, H), no bias.
    """
    B, S, E = x.shape
    H = w_hh.shape[1]
    R = w_out.shape[0]

    # Parameter prep (done once, outside the kernel):
    wih_T = w_ih.T                                                        # (E, 3H)
    # b_hr / b_hz can be folded into the input projection; b_hn cannot
    # (it sits inside the r * (...) term).
    b_comb = jnp.concatenate(
        [b_ih[:2 * H] + b_hh[:2 * H], b_ih[2 * H:]]).reshape(1, 3 * H)    # (1, 3H)
    whh_r = w_hh[:H].T                                                    # (H, H)
    whh_z = w_hh[H:2 * H].T                                               # (H, H)
    whh_n = w_hh[2 * H:].T                                                # (H, H)
    b_hn = b_hh[2 * H:].reshape(1, H)                                     # (1, H)
    wout_T = w_out.T                                                      # (H, R)

    return pl.pallas_call(
        gru_linear_kernel,
        out_shape=jax.ShapeDtypeStruct((B, S, R), jnp.float32),
        in_specs=[pl.BlockSpec(memory_space=pltpu.MemorySpace.VMEM)] * 8,
        out_specs=pl.BlockSpec(memory_space=pltpu.MemorySpace.VMEM),
        scratch_shapes=[
            pltpu.VMEM((B, S, H), jnp.float32),   # gi_r
            pltpu.VMEM((B, S, H), jnp.float32),   # gi_z
            pltpu.VMEM((B, S, H), jnp.float32),   # gi_n
            pltpu.VMEM((B, S, H), jnp.float32),   # h history
        ],
    )(x, wih_T, b_comb, whh_r, whh_z, whh_n, b_hn, wout_T)


def ref_forward(x, w_ih, w_hh, b_ih, b_hh, w_out):
    """Pure-JAX reference of torch.nn.GRU(batch_first=True) + Linear(bias=False)."""
    B, S, E = x.shape
    H = w_hh.shape[1]

    def cell(h, x_t):
        gi = x_t @ w_ih.T + b_ih
        gh = h @ w_hh.T + b_hh
        r = jax.nn.sigmoid(gi[:, :H] + gh[:, :H])
        z = jax.nn.sigmoid(gi[:, H:2 * H] + gh[:, H:2 * H])
        n = jnp.tanh(gi[:, 2 * H:] + r * gh[:, 2 * H:])
        h_new = (1.0 - z) * n + z * h
        return h_new, h_new

    _, hs = lax.scan(cell, jnp.zeros((B, H), jnp.float32), jnp.transpose(x, (1, 0, 2)))
    i = jnp.transpose(hs, (1, 0, 2))  # (B, S, H)
    return i @ w_out.T


if __name__ == "__main__":
    # net_params: event_vector_size=32, rnn_hidden_size=32, n_roles=8
    B, S, E, H, R = 2, 8, 32, 32, 8

    key = jax.random.PRNGKey(0)
    kx, k1, k2, k3, k4, k5 = jax.random.split(key, 6)

    # Deterministic parameter init (PyTorch-style uniform(-1/sqrt(H), 1/sqrt(H))).
    bound = 1.0 / jnp.sqrt(jnp.float32(H))
    w_ih = jax.random.uniform(k1, (3 * H, E), jnp.float32, -bound, bound)
    w_hh = jax.random.uniform(k2, (3 * H, H), jnp.float32, -bound, bound)
    b_ih = jax.random.uniform(k3, (3 * H,), jnp.float32, -bound, bound)
    b_hh = jax.random.uniform(k4, (3 * H,), jnp.float32, -bound, bound)
    w_out = jax.random.uniform(k5, (R, H), jnp.float32, -bound, bound)

    x = jax.random.normal(kx, (B, S, E), jnp.float32)

    out = net_forward(x, w_ih, w_hh, b_ih, b_hh, w_out)
    out = jax.block_until_ready(out)

    expected = ref_forward(x, w_ih, w_hh, b_ih, b_hh, w_out)
    np.testing.assert_allclose(np.asarray(out), np.asarray(expected), rtol=1e-5, atol=1e-5)

    print("KERNEL_OK")
</pallas_src>

<mosaic_0001>
module attributes {stable_mosaic.version = 11 : i64} {
  func.func @gru_linear_kernel(%arg0: memref<2x8x32xf32, #tpu.memory_space<vmem>>, %arg1: memref<32x96xf32, #tpu.memory_space<vmem>>, %arg2: memref<1x96xf32, #tpu.memory_space<vmem>>, %arg3: memref<32x32xf32, #tpu.memory_space<vmem>>, %arg4: memref<32x32xf32, #tpu.memory_space<vmem>>, %arg5: memref<32x32xf32, #tpu.memory_space<vmem>>, %arg6: memref<1x32xf32, #tpu.memory_space<vmem>>, %arg7: memref<32x8xf32, #tpu.memory_space<vmem>>, %arg8: memref<2x8x8xf32, #tpu.memory_space<vmem>>, %arg9: memref<2x8x32xf32, #tpu.memory_space<vmem>>, %arg10: memref<2x8x32xf32, #tpu.memory_space<vmem>>, %arg11: memref<2x8x32xf32, #tpu.memory_space<vmem>>, %arg12: memref<2x8x32xf32, #tpu.memory_space<vmem>>) attributes {dimension_semantics = [], scalar_prefetch = 0 : i64, scratch_operands = 4 : i64, tpu.core_type = #tpu.core_type<tc>} {
    %c0 = arith.constant 0 : index
    %c0_0 = arith.constant 0 : index
    %c0_1 = arith.constant 0 : index
    %0 = vector.load %arg0[%c0, %c0_0, %c0_1] : memref<2x8x32xf32, #tpu.memory_space<vmem>>, vector<2x8x32xf32>
    %1 = vector.shape_cast %0 : vector<2x8x32xf32> to vector<16x32xf32>
    %c0_2 = arith.constant 0 : index
    %c0_3 = arith.constant 0 : index
    %2 = vector.load %arg1[%c0_2, %c0_3] : memref<32x96xf32, #tpu.memory_space<vmem>>, vector<32x96xf32>
    %cst = arith.constant dense<0.000000e+00> : vector<16x96xf32>
    %3 = tpu.matmul %1, %2, %cst {dimension_numbers = #tpu.dot_dimension_numbers<[1], [0], [0], [1], [0, 0, 1, 1], [], []>} : vector<16x32xf32>, vector<32x96xf32>, vector<16x96xf32> -> vector<16x96xf32>
    %c0_4 = arith.constant 0 : index
    %c0_5 = arith.constant 0 : index
    %4 = vector.load %arg2[%c0_4, %c0_5] : memref<1x96xf32, #tpu.memory_space<vmem>>, vector<1x96xf32>
    %5 = vector.broadcast %4 : vector<1x96xf32> to vector<16x96xf32>
    %6 = arith.addf %3, %5 : vector<16x96xf32>
    %7 = vector.extract_strided_slice %6 {offsets = [0, 0], sizes = [16, 32], strides = [1, 1]} : vector<16x96xf32> to vector<16x32xf32>
    %8 = vector.shape_cast %7 : vector<16x32xf32> to vector<2x8x32xf32>
    %c0_6 = arith.constant 0 : index
    %c0_7 = arith.constant 0 : index
    %c0_8 = arith.constant 0 : index
    %9 = vector.load %arg9[%c0_6, %c0_7, %c0_8] : memref<2x8x32xf32, #tpu.memory_space<vmem>>, vector<2x8x32xf32>
    tpu.vector_store %arg9[%c0_6, %c0_7, %c0_8], %8 {strides = array<i32>} : memref<2x8x32xf32, #tpu.memory_space<vmem>>, vector<2x8x32xf32>,
    %10 = vector.extract_strided_slice %6 {offsets = [0, 32], sizes = [16, 32], strides = [1, 1]} : vector<16x96xf32> to vector<16x32xf32>
    %11 = vector.shape_cast %10 : vector<16x32xf32> to vector<2x8x32xf32>
    %c0_9 = arith.constant 0 : index
    %c0_10 = arith.constant 0 : index
    %c0_11 = arith.constant 0 : index
    %12 = vector.load %arg10[%c0_9, %c0_10, %c0_11] : memref<2x8x32xf32, #tpu.memory_space<vmem>>, vector<2x8x32xf32>
    tpu.vector_store %arg10[%c0_9, %c0_10, %c0_11], %11 {strides = array<i32>} : memref<2x8x32xf32, #tpu.memory_space<vmem>>, vector<2x8x32xf32>,
    %13 = vector.extract_strided_slice %6 {offsets = [0, 64], sizes = [16, 32], strides = [1, 1]} : vector<16x96xf32> to vector<16x32xf32>
    %14 = vector.shape_cast %13 : vector<16x32xf32> to vector<2x8x32xf32>
    %c0_12 = arith.constant 0 : index
    %c0_13 = arith.constant 0 : index
    %c0_14 = arith.constant 0 : index
    %15 = vector.load %arg11[%c0_12, %c0_13, %c0_14] : memref<2x8x32xf32, #tpu.memory_space<vmem>>, vector<2x8x32xf32>
    tpu.vector_store %arg11[%c0_12, %c0_13, %c0_14], %14 {strides = array<i32>} : memref<2x8x32xf32, #tpu.memory_space<vmem>>, vector<2x8x32xf32>,
    %c0_15 = arith.constant 0 : index
    %c0_16 = arith.constant 0 : index
    %16 = vector.load %arg3[%c0_15, %c0_16] : memref<32x32xf32, #tpu.memory_space<vmem>>, vector<32x32xf32>
    %c0_17 = arith.constant 0 : index
    %c0_18 = arith.constant 0 : index
    %17 = vector.load %arg4[%c0_17, %c0_18] : memref<32x32xf32, #tpu.memory_space<vmem>>, vector<32x32xf32>
    %c0_19 = arith.constant 0 : index
    %c0_20 = arith.constant 0 : index
    %18 = vector.load %arg5[%c0_19, %c0_20] : memref<32x32xf32, #tpu.memory_space<vmem>>, vector<32x32xf32>
    %c0_21 = arith.constant 0 : index
    %c0_22 = arith.constant 0 : index
    %19 = vector.load %arg6[%c0_21, %c0_22] : memref<1x32xf32, #tpu.memory_space<vmem>>, vector<1x32xf32>
    %20 = vector.shape_cast %19 : vector<1x32xf32> to vector<1x32xf32>
    %21 = vector.broadcast %20 : vector<1x32xf32> to vector<2x32xf32>
    %c0_23 = arith.constant 0 : index
    %c0_24 = arith.constant 0 : index
    %22 = vector.load %arg7[%c0_23, %c0_24] : memref<32x8xf32, #tpu.memory_space<vmem>>, vector<32x8xf32>
    %cst_25 = arith.constant 0.000000e+00 : f32
    %23 = vector.broadcast %cst_25 : f32 to vector<2x32xf32>
    %cst_26 = arith.constant dense<0.000000e+00> : vector<2x32xf32>
    %24 = tpu.matmul %23, %16, %cst_26 {dimension_numbers = #tpu.dot_dimension_numbers<[1], [0], [0], [1], [0, 0, 1, 1], [], []>} : vector<2x32xf32>, vector<32x32xf32>, vector<2x32xf32> -> vector<2x32xf32>
    %cst_27 = arith.constant dense<0.000000e+00> : vector<2x32xf32>
    %25 = tpu.matmul %23, %17, %cst_27 {dimension_numbers = #tpu.dot_dimension_numbers<[1], [0], [0], [1], [0, 0, 1, 1], [], []>} : vector<2x32xf32>, vector<32x32xf32>, vector<2x32xf32> -> vector<2x32xf32>
    %cst_28 = arith.constant dense<0.000000e+00> : vector<2x32xf32>
    %26 = tpu.matmul %23, %18, %cst_28 {dimension_numbers = #tpu.dot_dimension_numbers<[1], [0], [0], [1], [0, 0, 1, 1], [], []>} : vector<2x32xf32>, vector<32x32xf32>, vector<2x32xf32> -> vector<2x32xf32>
    %27 = arith.addf %26, %21 : vector<2x32xf32>
    %c0_29 = arith.constant 0 : index
    %c0_30 = arith.constant 0 : index
    %c0_31 = arith.constant 0 : index
    %28 = vector.load %arg9[%c0_29, %c0_30, %c0_31] : memref<2x8x32xf32, #tpu.memory_space<vmem>>, vector<2x1x32xf32>
    %29 = vector.shape_cast %28 : vector<2x1x32xf32> to vector<2x32xf32>
    %30 = arith.addf %29, %24 : vector<2x32xf32>
    %31 = arith.negf %30 : vector<2x32xf32>
    %32 = math.exp %31 : vector<2x32xf32>
    %cst_32 = arith.constant 1.000000e+00 : f32
    %33 = vector.broadcast %cst_32 : f32 to vector<2x32xf32>
    %34 = arith.addf %33, %32 : vector<2x32xf32>
    %35 = arith.divf %33, %34 : vector<2x32xf32>
    %c0_33 = arith.constant 0 : index
    %c0_34 = arith.constant 0 : index
    %c0_35 = arith.constant 0 : index
    %36 = vector.load %arg10[%c0_33, %c0_34, %c0_35] : memref<2x8x32xf32, #tpu.memory_space<vmem>>, vector<2x1x32xf32>
    %37 = vector.shape_cast %36 : vector<2x1x32xf32> to vector<2x32xf32>
    %38 = arith.addf %37, %25 : vector<2x32xf32>
    %39 = arith.negf %38 : vector<2x32xf32>
    %40 = math.exp %39 : vector<2x32xf32>
    %cst_36 = arith.constant 1.000000e+00 : f32
    %41 = vector.broadcast %cst_36 : f32 to vector<2x32xf32>
    %42 = arith.addf %41, %40 : vector<2x32xf32>
    %43 = arith.divf %41, %42 : vector<2x32xf32>
    %c0_37 = arith.constant 0 : index
    %c0_38 = arith.constant 0 : index
    %c0_39 = arith.constant 0 : index
    %44 = vector.load %arg11[%c0_37, %c0_38, %c0_39] : memref<2x8x32xf32, #tpu.memory_space<vmem>>, vector<2x1x32xf32>
    %45 = vector.shape_cast %44 : vector<2x1x32xf32> to vector<2x32xf32>
    %46 = arith.mulf %35, %27 : vector<2x32xf32>
    %47 = arith.addf %45, %46 : vector<2x32xf32>
    %48 = math.tanh %47 : vector<2x32xf32>
    %cst_40 = arith.constant 1.000000e+00 : f32
    %49 = vector.broadcast %cst_40 : f32 to vector<2x32xf32>
    %50 = arith.subf %49, %43 : vector<2x32xf32>
    %51 = arith.mulf %50, %48 : vector<2x32xf32>
    %52 = arith.mulf %43, %23 : vector<2x32xf32>
    %53 = arith.addf %51, %52 : vector<2x32xf32>
    %c0_41 = arith.constant 0 : index
    %c0_42 = arith.constant 0 : index
    %c0_43 = arith.constant 0 : index
    %54 = vector.load %arg12[%c0_41, %c0_42, %c0_43] : memref<2x8x32xf32, #tpu.memory_space<vmem>>, vector<2x1x32xf32>
    %55 = vector.shape_cast %54 : vector<2x1x32xf32> to vector<2x32xf32>
    %56 = vector.shape_cast %53 : vector<2x32xf32> to vector<2x1x32xf32>
    tpu.vector_store %arg12[%c0_41, %c0_42, %c0_43], %56 {strides = array<i32>} : memref<2x8x32xf32, #tpu.memory_space<vmem>>, vector<2x1x32xf32>,
    %cst_44 = arith.constant dense<0.000000e+00> : vector<2x32xf32>
    %57 = tpu.matmul %53, %16, %cst_44 {dimension_numbers = #tpu.dot_dimension_numbers<[1], [0], [0], [1], [0, 0, 1, 1], [], []>} : vector<2x32xf32>, vector<32x32xf32>, vector<2x32xf32> -> vector<2x32xf32>
    %cst_45 = arith.constant dense<0.000000e+00> : vector<2x32xf32>
    %58 = tpu.matmul %53, %17, %cst_45 {dimension_numbers = #tpu.dot_dimension_numbers<[1], [0], [0], [1], [0, 0, 1, 1], [], []>} : vector<2x32xf32>, vector<32x32xf32>, vector<2x32xf32> -> vector<2x32xf32>
    %cst_46 = arith.constant dense<0.000000e+00> : vector<2x32xf32>
    %59 = tpu.matmul %53, %18, %cst_46 {dimension_numbers = #tpu.dot_dimension_numbers<[1], [0], [0], [1], [0, 0, 1, 1], [], []>} : vector<2x32xf32>, vector<32x32xf32>, vector<2x32xf32> -> vector<2x32xf32>
    %60 = arith.addf %59, %21 : vector<2x32xf32>
    %c0_47 = arith.constant 0 : index
    %c1 = arith.constant 1 : index
    %c0_48 = arith.constant 0 : index
    %61 = vector.load %arg9[%c0_47, %c1, %c0_48] : memref<2x8x32xf32, #tpu.memory_space<vmem>>, vector<2x1x32xf32>
    %62 = vector.shape_cast %61 : vector<2x1x32xf32> to vector<2x32xf32>
    %63 = arith.addf %62, %57 : vector<2x32xf32>
    %64 = arith.negf %63 : vector<2x32xf32>
    %65 = math.exp %64 : vector<2x32xf32>
    %cst_49 = arith.constant 1.000000e+00 : f32
    %66 = vector.broadcast %cst_49 : f32 to vector<2x32xf32>
    %67 = arith.addf %66, %65 : vector<2x32xf32>
    %68 = arith.divf %66, %67 : vector<2x32xf32>
    %c0_50 = arith.constant 0 : index
    %c1_51 = arith.constant 1 : index
    %c0_52 = arith.constant 0 : index
    %69 = vector.load %arg10[%c0_50, %c1_51, %c0_52] : memref<2x8x32xf32, #tpu.memory_space<vmem>>, vector<2x1x32xf32>
    %70 = vector.shape_cast %69 : vector<2x1x32xf32> to vector<2x32xf32>
    %71 = arith.addf %70, %58 : vector<2x32xf32>
    %72 = arith.negf %71 : vector<2x32xf32>
    %73 = math.exp %72 : vector<2x32xf32>
    %cst_53 = arith.constant 1.000000e+00 : f32
    %74 = vector.broadcast %cst_53 : f32 to vector<2x32xf32>
    %75 = arith.addf %74, %73 : vector<2x32xf32>
    %76 = arith.divf %74, %75 : vector<2x32xf32>
    %c0_54 = arith.constant 0 : index
    %c1_55 = arith.constant 1 : index
    %c0_56 = arith.constant 0 : index
    %77 = vector.load %arg11[%c0_54, %c1_55, %c0_56] : memref<2x8x32xf32, #tpu.memory_space<vmem>>, vector<2x1x32xf32>
    %78 = vector.shape_cast %77 : vector<2x1x32xf32> to vector<2x32xf32>
    %79 = arith.mulf %68, %60 : vector<2x32xf32>
    %80 = arith.addf %78, %79 : vector<2x32xf32>
    %81 = math.tanh %80 : vector<2x32xf32>
    %cst_57 = arith.constant 1.000000e+00 : f32
    %82 = vector.broadcast %cst_57 : f32 to vector<2x32xf32>
    %83 = arith.subf %82, %76 : vector<2x32xf32>
    %84 = arith.mulf %83, %81 : vector<2x32xf32>
    %85 = arith.mulf %76, %53 : vector<2x32xf32>
    %86 = arith.addf %84, %85 : vector<2x32xf32>
    %c0_58 = arith.constant 0 : index
    %c1_59 = arith.constant 1 : index
    %c0_60 = arith.constant 0 : index
    %87 = vector.load %arg12[%c0_58, %c1_59, %c0_60] : memref<2x8x32xf32, #tpu.memory_space<vmem>>, vector<2x1x32xf32>
    %88 = vector.shape_cast %87 : vector<2x1x32xf32> to vector<2x32xf32>
    %89 = vector.shape_cast %86 : vector<2x32xf32> to vector<2x1x32xf32>
    tpu.vector_store %arg12[%c0_58, %c1_59, %c0_60], %89 {strides = array<i32>} : memref<2x8x32xf32, #tpu.memory_space<vmem>>, vector<2x1x32xf32>,
    %cst_61 = arith.constant dense<0.000000e+00> : vector<2x32xf32>
    %90 = tpu.matmul %86, %16, %cst_61 {dimension_numbers = #tpu.dot_dimension_numbers<[1], [0], [0], [1], [0, 0, 1, 1], [], []>} : vector<2x32xf32>, vector<32x32xf32>, vector<2x32xf32> -> vector<2x32xf32>
    %cst_62 = arith.constant dense<0.000000e+00> : vector<2x32xf32>
    %91 = tpu.matmul %86, %17, %cst_62 {dimension_numbers = #tpu.dot_dimension_numbers<[1], [0], [0], [1], [0, 0, 1, 1], [], []>} : vector<2x32xf32>, vector<32x32xf32>, vector<2x32xf32> -> vector<2x32xf32>
    %cst_63 = arith.constant dense<0.000000e+00> : vector<2x32xf32>
    %92 = tpu.matmul %86, %18, %cst_63 {dimension_numbers = #tpu.dot_dimension_numbers<[1], [0], [0], [1], [0, 0, 1, 1], [], []>} : vector<2x32xf32>, vector<32x32xf32>, vector<2x32xf32> -> vector<2x32xf32>
    %93 = arith.addf %92, %21 : vector<2x32xf32>
    %c0_64 = arith.constant 0 : index
    %c2 = arith.constant 2 : index
    %c0_65 = arith.constant 0 : index
    %94 = vector.load %arg9[%c0_64, %c2, %c0_65] : memref<2x8x32xf32, #tpu.memory_space<vmem>>, vector<2x1x32xf32>
    %95 = vector.shape_cast %94 : vector<2x1x32xf32> to vector<2x32xf32>
    %96 = arith.addf %95, %90 : vector<2x32xf32>
    %97 = arith.negf %96 : vector<2x32xf32>
    %98 = math.exp %97 : vector<2x32xf32>
    %cst_66 = arith.constant 1.000000e+00 : f32
    %99 = vector.broadcast %cst_66 : f32 to vector<2x32xf32>
    %100 = arith.addf %99, %98 : vector<2x32xf32>
    %101 = arith.divf %99, %100 : vector<2x32xf32>
    %c0_67 = arith.constant 0 : index
    %c2_68 = arith.constant 2 : index
    %c0_69 = arith.constant 0 : index
    %102 = vector.load %arg10[%c0_67, %c2_68, %c0_69] : memref<2x8x32xf32, #tpu.memory_space<vmem>>, vector<2x1x32xf32>
    %103 = vector.shape_cast %102 : vector<2x1x32xf32> to vector<2x32xf32>
    %104 = arith.addf %103, %91 : vector<2x32xf32>
    %105 = arith.negf %104 : vector<2x32xf32>
    %106 = math.exp %105 : vector<2x32xf32>
    %cst_70 = arith.constant 1.000000e+00 : f32
    %107 = vector.broadcast %cst_70 : f32 to vector<2x32xf32>
    %108 = arith.addf %107, %106 : vector<2x32xf32>
    %109 = arith.divf %107, %108 : vector<2x32xf32>
    %c0_71 = arith.constant 0 : index
    %c2_72 = arith.constant 2 : index
    %c0_73 = arith.constant 0 : index
    %110 = vector.load %arg11[%c0_71, %c2_72, %c0_73] : memref<2x8x32xf32, #tpu.memory_space<vmem>>, vector<2x1x32xf32>
    %111 = vector.shape_cast %110 : vector<2x1x32xf32> to vector<2x32xf32>
    %112 = arith.mulf %101, %93 : vector<2x32xf32>
    %113 = arith.addf %111, %112 : vector<2x32xf32>
    %114 = math.tanh %113 : vector<2x32xf32>
    %cst_74 = arith.constant 1.000000e+00 : f32
    %115 = vector.broadcast %cst_74 : f32 to vector<2x32xf32>
    %116 = arith.subf %115, %109 : vector<2x32xf32>
    %117 = arith.mulf %116, %114 : vector<2x32xf32>
    %118 = arith.mulf %109, %86 : vector<2x32xf32>
    %119 = arith.addf %117, %118 : vector<2x32xf32>
    %c0_75 = arith.constant 0 : index
    %c2_76 = arith.constant 2 : index
    %c0_77 = arith.constant 0 : index
    %120 = vector.load %arg12[%c0_75, %c2_76, %c0_77] : memref<2x8x32xf32, #tpu.memory_space<vmem>>, vector<2x1x32xf32>
    %121 = vector.shape_cast %120 : vector<2x1x32xf32> to vector<2x32xf32>
    %122 = vector.shape_cast %119 : vector<2x32xf32> to vector<2x1x32xf32>
    tpu.vector_store %arg12[%c0_75, %c2_76, %c0_77], %122 {strides = array<i32>} : memref<2x8x32xf32, #tpu.memory_space<vmem>>, vector<2x1x32xf32>,
    %cst_78 = arith.constant dense<0.000000e+00> : vector<2x32xf32>
    %123 = tpu.matmul %119, %16, %cst_78 {dimension_numbers = #tpu.dot_dimension_numbers<[1], [0], [0], [1], [0, 0, 1, 1], [], []>} : vector<2x32xf32>, vector<32x32xf32>, vector<2x32xf32> -> vector<2x32xf32>
    %cst_79 = arith.constant dense<0.000000e+00> : vector<2x32xf32>
    %124 = tpu.matmul %119, %17, %cst_79 {dimension_numbers = #tpu.dot_dimension_numbers<[1], [0], [0], [1], [0, 0, 1, 1], [], []>} : vector<2x32xf32>, vector<32x32xf32>, vector<2x32xf32> -> vector<2x32xf32>
    %cst_80 = arith.constant dense<0.000000e+00> : vector<2x32xf32>
    %125 = tpu.matmul %119, %18, %cst_80 {dimension_numbers = #tpu.dot_dimension_numbers<[1], [0], [0], [1], [0, 0, 1, 1], [], []>} : vector<2x32xf32>, vector<32x32xf32>, vector<2x32xf32> -> vector<2x32xf32>
    %126 = arith.addf %125, %21 : vector<2x32xf32>
    %c0_81 = arith.constant 0 : index
    %c3 = arith.constant 3 : index
    %c0_82 = arith.constant 0 : index
    %127 = vector.load %arg9[%c0_81, %c3, %c0_82] : memref<2x8x32xf32, #tpu.memory_space<vmem>>, vector<2x1x32xf32>
    %128 = vector.shape_cast %127 : vector<2x1x32xf32> to vector<2x32xf32>
    %129 = arith.addf %128, %123 : vector<2x32xf32>
    %130 = arith.negf %129 : vector<2x32xf32>
    %131 = math.exp %130 : vector<2x32xf32>
    %cst_83 = arith.constant 1.000000e+00 : f32
    %132 = vector.broadcast %cst_83 : f32 to vector<2x32xf32>
    %133 = arith.addf %132, %131 : vector<2x32xf32>
    %134 = arith.divf %132, %133 : vector<2x32xf32>
    %c0_84 = arith.constant 0 : index
    %c3_85 = arith.constant 3 : index
    %c0_86 = arith.constant 0 : index
    %135 = vector.load %arg10[%c0_84, %c3_85, %c0_86] : memref<2x8x32xf32, #tpu.memory_space<vmem>>, vector<2x1x32xf32>
    %136 = vector.shape_cast %135 : vector<2x1x32xf32> to vector<2x32xf32>
    %137 = arith.addf %136, %124 : vector<2x32xf32>
    %138 = arith.negf %137 : vector<2x32xf32>
    %139 = math.exp %138 : vector<2x32xf32>
    %cst_87 = arith.constant 1.000000e+00 : f32
    %140 = vector.broadcast %cst_87 : f32 to vector<2x32xf32>
    %141 = arith.addf %140, %139 : vector<2x32xf32>
    %142 = arith.divf %140, %141 : vector<2x32xf32>
    %c0_88 = arith.constant 0 : index
    %c3_89 = arith.constant 3 : index
    %c0_90 = arith.constant 0 : index
    %143 = vector.load %arg11[%c0_88, %c3_89, %c0_90] : memref<2x8x32xf32, #tpu.memory_space<vmem>>, vector<2x1x32xf32>
    %144 = vector.shape_cast %143 : vector<2x1x32xf32> to vector<2x32xf32>
    %145 = arith.mulf %134, %126 : vector<2x32xf32>
    %146 = arith.addf %144, %145 : vector<2x32xf32>
    %147 = math.tanh %146 : vector<2x32xf32>
    %cst_91 = arith.constant 1.000000e+00 : f32
    %148 = vector.broadcast %cst_91 : f32 to vector<2x32xf32>
    %149 = arith.subf %148, %142 : vector<2x32xf32>
    %150 = arith.mulf %149, %147 : vector<2x32xf32>
    %151 = arith.mulf %142, %119 : vector<2x32xf32>
    %152 = arith.addf %150, %151 : vector<2x32xf32>
    %c0_92 = arith.constant 0 : index
    %c3_93 = arith.constant 3 : index
    %c0_94 = arith.constant 0 : index
    %153 = vector.load %arg12[%c0_92, %c3_93, %c0_94] : memref<2x8x32xf32, #tpu.memory_space<vmem>>, vector<2x1x32xf32>
    %154 = vector.shape_cast %153 : vector<2x1x32xf32> to vector<2x32xf32>
    %155 = vector.shape_cast %152 : vector<2x32xf32> to vector<2x1x32xf32>
    tpu.vector_store %arg12[%c0_92, %c3_93, %c0_94], %155 {strides = array<i32>} : memref<2x8x32xf32, #tpu.memory_space<vmem>>, vector<2x1x32xf32>,
    %cst_95 = arith.constant dense<0.000000e+00> : vector<2x32xf32>
    %156 = tpu.matmul %152, %16, %cst_95 {dimension_numbers = #tpu.dot_dimension_numbers<[1], [0], [0], [1], [0, 0, 1, 1], [], []>} : vector<2x32xf32>, vector<32x32xf32>, vector<2x32xf32> -> vector<2x32xf32>
    %cst_96 = arith.constant dense<0.000000e+00> : vector<2x32xf32>
    %157 = tpu.matmul %152, %17, %cst_96 {dimension_numbers = #tpu.dot_dimension_numbers<[1], [0], [0], [1], [0, 0, 1, 1], [], []>} : vector<2x32xf32>, vector<32x32xf32>, vector<2x32xf32> -> vector<2x32xf32>
    %cst_97 = arith.constant dense<0.000000e+00> : vector<2x32xf32>
    %158 = tpu.matmul %152, %18, %cst_97 {dimension_numbers = #tpu.dot_dimension_numbers<[1], [0], [0], [1], [0, 0, 1, 1], [], []>} : vector<2x32xf32>, vector<32x32xf32>, vector<2x32xf32> -> vector<2x32xf32>
    %159 = arith.addf %158, %21 : vector<2x32xf32>
    %c0_98 = arith.constant 0 : index
    %c4 = arith.constant 4 : index
    %c0_99 = arith.constant 0 : index
    %160 = vector.load %arg9[%c0_98, %c4, %c0_99] : memref<2x8x32xf32, #tpu.memory_space<vmem>>, vector<2x1x32xf32>
    %161 = vector.shape_cast %160 : vector<2x1x32xf32> to vector<2x32xf32>
    %162 = arith.addf %161, %156 : vector<2x32xf32>
    %163 = arith.negf %162 : vector<2x32xf32>
    %164 = math.exp %163 : vector<2x32xf32>
    %cst_100 = arith.constant 1.000000e+00 : f32
    %165 = vector.broadcast %cst_100 : f32 to vector<2x32xf32>
    %166 = arith.addf %165, %164 : vector<2x32xf32>
    %167 = arith.divf %165, %166 : vector<2x32xf32>
    %c0_101 = arith.constant 0 : index
    %c4_102 = arith.constant 4 : index
    %c0_103 = arith.constant 0 : index
    %168 = vector.load %arg10[%c0_101, %c4_102, %c0_103] : memref<2x8x32xf32, #tpu.memory_space<vmem>>, vector<2x1x32xf32>
    %169 = vector.shape_cast %168 : vector<2x1x32xf32> to vector<2x32xf32>
    %170 = arith.addf %169, %157 : vector<2x32xf32>
    %171 = arith.negf %170 : vector<2x32xf32>
    %172 = math.exp %171 : vector<2x32xf32>
    %cst_104 = arith.constant 1.000000e+00 : f32
    %173 = vector.broadcast %cst_104 : f32 to vector<2x32xf32>
    %174 = arith.addf %173, %172 : vector<2x32xf32>
    %175 = arith.divf %173, %174 : vector<2x32xf32>
    %c0_105 = arith.constant 0 : index
    %c4_106 = arith.constant 4 : index
    %c0_107 = arith.constant 0 : index
    %176 = vector.load %arg11[%c0_105, %c4_106, %c0_107] : memref<2x8x32xf32, #tpu.memory_space<vmem>>, vector<2x1x32xf32>
    %177 = vector.shape_cast %176 : vector<2x1x32xf32> to vector<2x32xf32>
    %178 = arith.mulf %167, %159 : vector<2x32xf32>
    %179 = arith.addf %177, %178 : vector<2x32xf32>
    %180 = math.tanh %179 : vector<2x32xf32>
    %cst_108 = arith.constant 1.000000e+00 : f32
    %181 = vector.broadcast %cst_108 : f32 to vector<2x32xf32>
    %182 = arith.subf %181, %175 : vector<2x32xf32>
    %183 = arith.mulf %182, %180 : vector<2x32xf32>
    %184 = arith.mulf %175, %152 : vector<2x32xf32>
    %185 = arith.addf %183, %184 : vector<2x32xf32>
    %c0_109 = arith.constant 0 : index
    %c4_110 = arith.constant 4 : index
    %c0_111 = arith.constant 0 : index
    %186 = vector.load %arg12[%c0_109, %c4_110, %c0_111] : memref<2x8x32xf32, #tpu.memory_space<vmem>>, vector<2x1x32xf32>
    %187 = vector.shape_cast %186 : vector<2x1x32xf32> to vector<2x32xf32>
    %188 = vector.shape_cast %185 : vector<2x32xf32> to vector<2x1x32xf32>
    tpu.vector_store %arg12[%c0_109, %c4_110, %c0_111], %188 {strides = array<i32>} : memref<2x8x32xf32, #tpu.memory_space<vmem>>, vector<2x1x32xf32>,
    %cst_112 = arith.constant dense<0.000000e+00> : vector<2x32xf32>
    %189 = tpu.matmul %185, %16, %cst_112 {dimension_numbers = #tpu.dot_dimension_numbers<[1], [0], [0], [1], [0, 0, 1, 1], [], []>} : vector<2x32xf32>, vector<32x32xf32>, vector<2x32xf32> -> vector<2x32xf32>
    %cst_113 = arith.constant dense<0.000000e+00> : vector<2x32xf32>
    %190 = tpu.matmul %185, %17, %cst_113 {dimension_numbers = #tpu.dot_dimension_numbers<[1], [0], [0], [1], [0, 0, 1, 1], [], []>} : vector<2x32xf32>, vector<32x32xf32>, vector<2x32xf32> -> vector<2x32xf32>
    %cst_114 = arith.constant dense<0.000000e+00> : vector<2x32xf32>
    %191 = tpu.matmul %185, %18, %cst_114 {dimension_numbers = #tpu.dot_dimension_numbers<[1], [0], [0], [1], [0, 0, 1, 1], [], []>} : vector<2x32xf32>, vector<32x32xf32>, vector<2x32xf32> -> vector<2x32xf32>
    %192 = arith.addf %191, %21 : vector<2x32xf32>
    %c0_115 = arith.constant 0 : index
    %c5 = arith.constant 5 : index
    %c0_116 = arith.constant 0 : index
    %193 = vector.load %arg9[%c0_115, %c5, %c0_116] : memref<2x8x32xf32, #tpu.memory_space<vmem>>, vector<2x1x32xf32>
    %194 = vector.shape_cast %193 : vector<2x1x32xf32> to vector<2x32xf32>
    %195 = arith.addf %194, %189 : vector<2x32xf32>
    %196 = arith.negf %195 : vector<2x32xf32>
    %197 = math.exp %196 : vector<2x32xf32>
    %cst_117 = arith.constant 1.000000e+00 : f32
    %198 = vector.broadcast %cst_117 : f32 to vector<2x32xf32>
    %199 = arith.addf %198, %197 : vector<2x32xf32>
    %200 = arith.divf %198, %199 : vector<2x32xf32>
    %c0_118 = arith.constant 0 : index
    %c5_119 = arith.constant 5 : index
    %c0_120 = arith.constant 0 : index
    %201 = vector.load %arg10[%c0_118, %c5_119, %c0_120] : memref<2x8x32xf32, #tpu.memory_space<vmem>>, vector<2x1x32xf32>
    %202 = vector.shape_cast %201 : vector<2x1x32xf32> to vector<2x32xf32>
    %203 = arith.addf %202, %190 : vector<2x32xf32>
    %204 = arith.negf %203 : vector<2x32xf32>
    %205 = math.exp %204 : vector<2x32xf32>
    %cst_121 = arith.constant 1.000000e+00 : f32
    %206 = vector.broadcast %cst_121 : f32 to vector<2x32xf32>
    %207 = arith.addf %206, %205 : vector<2x32xf32>
    %208 = arith.divf %206, %207 : vector<2x32xf32>
    %c0_122 = arith.constant 0 : index
    %c5_123 = arith.constant 5 : index
    %c0_124 = arith.constant 0 : index
    %209 = vector.load %arg11[%c0_122, %c5_123, %c0_124] : memref<2x8x32xf32, #tpu.memory_space<vmem>>, vector<2x1x32xf32>
    %210 = vector.shape_cast %209 : vector<2x1x32xf32> to vector<2x32xf32>
    %211 = arith.mulf %200, %192 : vector<2x32xf32>
    %212 = arith.addf %210, %211 : vector<2x32xf32>
    %213 = math.tanh %212 : vector<2x32xf32>
    %cst_125 = arith.constant 1.000000e+00 : f32
    %214 = vector.broadcast %cst_125 : f32 to vector<2x32xf32>
    %215 = arith.subf %214, %208 : vector<2x32xf32>
    %216 = arith.mulf %215, %213 : vector<2x32xf32>
    %217 = arith.mulf %208, %185 : vector<2x32xf32>
    %218 = arith.addf %216, %217 : vector<2x32xf32>
    %c0_126 = arith.constant 0 : index
    %c5_127 = arith.constant 5 : index
    %c0_128 = arith.constant 0 : index
    %219 = vector.load %arg12[%c0_126, %c5_127, %c0_128] : memref<2x8x32xf32, #tpu.memory_space<vmem>>, vector<2x1x32xf32>
    %220 = vector.shape_cast %219 : vector<2x1x32xf32> to vector<2x32xf32>
    %221 = vector.shape_cast %218 : vector<2x32xf32> to vector<2x1x32xf32>
    tpu.vector_store %arg12[%c0_126, %c5_127, %c0_128], %221 {strides = array<i32>} : memref<2x8x32xf32, #tpu.memory_space<vmem>>, vector<2x1x32xf32>,
    %cst_129 = arith.constant dense<0.000000e+00> : vector<2x32xf32>
    %222 = tpu.matmul %218, %16, %cst_129 {dimension_numbers = #tpu.dot_dimension_numbers<[1], [0], [0], [1], [0, 0, 1, 1], [], []>} : vector<2x32xf32>, vector<32x32xf32>, vector<2x32xf32> -> vector<2x32xf32>
    %cst_130 = arith.constant dense<0.000000e+00> : vector<2x32xf32>
    %223 = tpu.matmul %218, %17, %cst_130 {dimension_numbers = #tpu.dot_dimension_numbers<[1], [0], [0], [1], [0, 0, 1, 1], [], []>} : vector<2x32xf32>, vector<32x32xf32>, vector<2x32xf32> -> vector<2x32xf32>
    %cst_131 = arith.constant dense<0.000000e+00> : vector<2x32xf32>
    %224 = tpu.matmul %218, %18, %cst_131 {dimension_numbers = #tpu.dot_dimension_numbers<[1], [0], [0], [1], [0, 0, 1, 1], [], []>} : vector<2x32xf32>, vector<32x32xf32>, vector<2x32xf32> -> vector<2x32xf32>
    %225 = arith.addf %224, %21 : vector<2x32xf32>
    %c0_132 = arith.constant 0 : index
    %c6 = arith.constant 6 : index
    %c0_133 = arith.constant 0 : index
    %226 = vector.load %arg9[%c0_132, %c6, %c0_133] : memref<2x8x32xf32, #tpu.memory_space<vmem>>, vector<2x1x32xf32>
    %227 = vector.shape_cast %226 : vector<2x1x32xf32> to vector<2x32xf32>
    %228 = arith.addf %227, %222 : vector<2x32xf32>
    %229 = arith.negf %228 : vector<2x32xf32>
    %230 = math.exp %229 : vector<2x32xf32>
    %cst_134 = arith.constant 1.000000e+00 : f32
    %231 = vector.broadcast %cst_134 : f32 to vector<2x32xf32>
    %232 = arith.addf %231, %230 : vector<2x32xf32>
    %233 = arith.divf %231, %232 : vector<2x32xf32>
    %c0_135 = arith.constant 0 : index
    %c6_136 = arith.constant 6 : index
    %c0_137 = arith.constant 0 : index
    %234 = vector.load %arg10[%c0_135, %c6_136, %c0_137] : memref<2x8x32xf32, #tpu.memory_space<vmem>>, vector<2x1x32xf32>
    %235 = vector.shape_cast %234 : vector<2x1x32xf32> to vector<2x32xf32>
    %236 = arith.addf %235, %223 : vector<2x32xf32>
    %237 = arith.negf %236 : vector<2x32xf32>
    %238 = math.exp %237 : vector<2x32xf32>
    %cst_138 = arith.constant 1.000000e+00 : f32
    %239 = vector.broadcast %cst_138 : f32 to vector<2x32xf32>
    %240 = arith.addf %239, %238 : vector<2x32xf32>
    %241 = arith.divf %239, %240 : vector<2x32xf32>
    %c0_139 = arith.constant 0 : index
    %c6_140 = arith.constant 6 : index
    %c0_141 = arith.constant 0 : index
    %242 = vector.load %arg11[%c0_139, %c6_140, %c0_141] : memref<2x8x32xf32, #tpu.memory_space<vmem>>, vector<2x1x32xf32>
    %243 = vector.shape_cast %242 : vector<2x1x32xf32> to vector<2x32xf32>
    %244 = arith.mulf %233, %225 : vector<2x32xf32>
    %245 = arith.addf %243, %244 : vector<2x32xf32>
    %246 = math.tanh %245 : vector<2x32xf32>
    %cst_142 = arith.constant 1.000000e+00 : f32
    %247 = vector.broadcast %cst_142 : f32 to vector<2x32xf32>
    %248 = arith.subf %247, %241 : vector<2x32xf32>
    %249 = arith.mulf %248, %246 : vector<2x32xf32>
    %250 = arith.mulf %241, %218 : vector<2x32xf32>
    %251 = arith.addf %249, %250 : vector<2x32xf32>
    %c0_143 = arith.constant 0 : index
    %c6_144 = arith.constant 6 : index
    %c0_145 = arith.constant 0 : index
    %252 = vector.load %arg12[%c0_143, %c6_144, %c0_145] : memref<2x8x32xf32, #tpu.memory_space<vmem>>, vector<2x1x32xf32>
    %253 = vector.shape_cast %252 : vector<2x1x32xf32> to vector<2x32xf32>
    %254 = vector.shape_cast %251 : vector<2x32xf32> to vector<2x1x32xf32>
    tpu.vector_store %arg12[%c0_143, %c6_144, %c0_145], %254 {strides = array<i32>} : memref<2x8x32xf32, #tpu.memory_space<vmem>>, vector<2x1x32xf32>,
    %cst_146 = arith.constant dense<0.000000e+00> : vector<2x32xf32>
    %255 = tpu.matmul %251, %16, %cst_146 {dimension_numbers = #tpu.dot_dimension_numbers<[1], [0], [0], [1], [0, 0, 1, 1], [], []>} : vector<2x32xf32>, vector<32x32xf32>, vector<2x32xf32> -> vector<2x32xf32>
    %cst_147 = arith.constant dense<0.000000e+00> : vector<2x32xf32>
    %256 = tpu.matmul %251, %17, %cst_147 {dimension_numbers = #tpu.dot_dimension_numbers<[1], [0], [0], [1], [0, 0, 1, 1], [], []>} : vector<2x32xf32>, vector<32x32xf32>, vector<2x32xf32> -> vector<2x32xf32>
    %cst_148 = arith.constant dense<0.000000e+00> : vector<2x32xf32>
    %257 = tpu.matmul %251, %18, %cst_148 {dimension_numbers = #tpu.dot_dimension_numbers<[1], [0], [0], [1], [0, 0, 1, 1], [], []>} : vector<2x32xf32>, vector<32x32xf32>, vector<2x32xf32> -> vector<2x32xf32>
    %258 = arith.addf %257, %21 : vector<2x32xf32>
    %c0_149 = arith.constant 0 : index
    %c7 = arith.constant 7 : index
    %c0_150 = arith.constant 0 : index
    %259 = vector.load %arg9[%c0_149, %c7, %c0_150] : memref<2x8x32xf32, #tpu.memory_space<vmem>>, vector<2x1x32xf32>
    %260 = vector.shape_cast %259 : vector<2x1x32xf32> to vector<2x32xf32>
    %261 = arith.addf %260, %255 : vector<2x32xf32>
    %262 = arith.negf %261 : vector<2x32xf32>
    %263 = math.exp %262 : vector<2x32xf32>
    %cst_151 = arith.constant 1.000000e+00 : f32
    %264 = vector.broadcast %cst_151 : f32 to vector<2x32xf32>
    %265 = arith.addf %264, %263 : vector<2x32xf32>
    %266 = arith.divf %264, %265 : vector<2x32xf32>
    %c0_152 = arith.constant 0 : index
    %c7_153 = arith.constant 7 : index
    %c0_154 = arith.constant 0 : index
    %267 = vector.load %arg10[%c0_152, %c7_153, %c0_154] : memref<2x8x32xf32, #tpu.memory_space<vmem>>, vector<2x1x32xf32>
    %268 = vector.shape_cast %267 : vector<2x1x32xf32> to vector<2x32xf32>
    %269 = arith.addf %268, %256 : vector<2x32xf32>
    %270 = arith.negf %269 : vector<2x32xf32>
    %271 = math.exp %270 : vector<2x32xf32>
    %cst_155 = arith.constant 1.000000e+00 : f32
    %272 = vector.broadcast %cst_155 : f32 to vector<2x32xf32>
    %273 = arith.addf %272, %271 : vector<2x32xf32>
    %274 = arith.divf %272, %273 : vector<2x32xf32>
    %c0_156 = arith.constant 0 : index
    %c7_157 = arith.constant 7 : index
    %c0_158 = arith.constant 0 : index
    %275 = vector.load %arg11[%c0_156, %c7_157, %c0_158] : memref<2x8x32xf32, #tpu.memory_space<vmem>>, vector<2x1x32xf32>
    %276 = vector.shape_cast %275 : vector<2x1x32xf32> to vector<2x32xf32>
    %277 = arith.mulf %266, %258 : vector<2x32xf32>
    %278 = arith.addf %276, %277 : vector<2x32xf32>
    %279 = math.tanh %278 : vector<2x32xf32>
    %cst_159 = arith.constant 1.000000e+00 : f32
    %280 = vector.broadcast %cst_159 : f32 to vector<2x32xf32>
    %281 = arith.subf %280, %274 : vector<2x32xf32>
    %282 = arith.mulf %281, %279 : vector<2x32xf32>
    %283 = arith.mulf %274, %251 : vector<2x32xf32>
    %284 = arith.addf %282, %283 : vector<2x32xf32>
    %c0_160 = arith.constant 0 : index
    %c7_161 = arith.constant 7 : index
    %c0_162 = arith.constant 0 : index
    %285 = vector.load %arg12[%c0_160, %c7_161, %c0_162] : memref<2x8x32xf32, #tpu.memory_space<vmem>>, vector<2x1x32xf32>
    %286 = vector.shape_cast %285 : vector<2x1x32xf32> to vector<2x32xf32>
    %287 = vector.shape_cast %284 : vector<2x32xf32> to vector<2x1x32xf32>
    tpu.vector_store %arg12[%c0_160, %c7_161, %c0_162], %287 {strides = array<i32>} : memref<2x8x32xf32, #tpu.memory_space<vmem>>, vector<2x1x32xf32>,
    %c0_163 = arith.constant 0 : index
    %c0_164 = arith.constant 0 : index
    %c0_165 = arith.constant 0 : index
    %288 = vector.load %arg12[%c0_163, %c0_164, %c0_165] : memref<2x8x32xf32, #tpu.memory_space<vmem>>, vector<2x8x32xf32>
    %289 = vector.shape_cast %288 : vector<2x8x32xf32> to vector<16x32xf32>
    %cst_166 = arith.constant dense<0.000000e+00> : vector<16x8xf32>
    %290 = tpu.matmul %289, %22, %cst_166 {dimension_numbers = #tpu.dot_dimension_numbers<[1], [0], [0], [1], [0, 0, 1, 1], [], []>} : vector<16x32xf32>, vector<32x8xf32>, vector<16x8xf32> -> vector<16x8xf32>
    %291 = vector.shape_cast %290 : vector<16x8xf32> to vector<2x8x8xf32>
    %c0_167 = arith.constant 0 : index
    %c0_168 = arith.constant 0 : index
    %c0_169 = arith.constant 0 : index
    %292 = vector.load %arg8[%c0_167, %c0_168, %c0_169] : memref<2x8x8xf32, #tpu.memory_space<vmem>>, vector<2x8x8xf32>
    tpu.vector_store %arg8[%c0_167, %c0_168, %c0_169], %291 {strides = array<i32>} : memref<2x8x8xf32, #tpu.memory_space<vmem>>, vector<2x8x8xf32>,
    return
  }
}

</mosaic_0001>

<bundles_post_ra>
// kernel: tpu_custom_call.1
= control target key start
LH: loop header
LB: loop body
LE: loop exit
PB: predicated region body
PF: predicated region fallthrough
CT: control target
= control target key end

     0   :  { %13 = vsyncpa [#allocation7], 0  ;;  %s3953_s0 = inlined_call_operand.hbm [shape: f32[2,8,32], index: 0, kind: input, shape index: {}]   ;;  %s3954_s1 = inlined_call_operand.vmem [shape: f32[32,96], index: 1, kind: input, shape index: {}]   ;;  %s3955_s2 = inlined_call_operand.vmem [shape: f32[1,96], index: 2, kind: input, shape index: {}]   ;;  %s3956_s3 = inlined_call_operand.hbm [shape: f32[32,32], index: 3, kind: input, shape index: {}]   ;;  %s3957_s4 = inlined_call_operand.hbm [shape: f32[32,32], index: 4, kind: input, shape index: {}]   ;;  %s3958_s5 = inlined_call_operand.hbm [shape: f32[32,32], index: 5, kind: input, shape index: {}]   ;;  %s3959_s6 = inlined_call_operand.vmem [shape: f32[1,32], index: 6, kind: input, shape index: {}]   ;;  %s3960_s7 = inlined_call_operand.vmem [shape: f32[32,8], index: 7, kind: input, shape index: {}]   ;;  %s3961_s8 = inlined_call_operand.hbm [shape: f32[2,8,8], index: 8, kind: output, shape index: {}]  }
   0x1   :  { %14 = vsyncpa [#allocation10], 0 }
   0x2   :  { %15 = vsyncpa [#allocation13], 0 }
   0x3   :  { %16 = vsyncpa [#allocation8], 0  ;;  %s3479_s27 = smov [#allocation9]   ;;  %s3480_s29 = smov [#allocation6]  }
   0x4   :  { %s38_s28 = sshll.u32 %s3479_s27, 4  ;;  %s22_s30 = sshll.u32 %s3480_s29, 4  ;;  %s39_s28 = int_to_ptr.vmem [resolvable:$true] %s38_s28  ;;  %s3536_s30 = int_to_ptr.vmem [resolvable:$true] %s22_s30 }
   0x5   :  { %s3361_s11 = scalar_lea.hbm %s3956_s3, 512 }
   0x6   :  { %p3362_p0 = scmp.ne.s32.totalorder %s3956_s3, %s3361_s11  ;;  %p3365_p1 = scmp.lt.u32.totalorder %s3361_s11, %s3956_s3 }
   0x8   :  { %p3367_p2 = pnand %p3365_p1, %p3362_p0 }
   0xa   :  { %3370 = shalt.err (!%p3367_p2)
}
   0xb   :  { %s3371_s16 = scalar_lea.vmem %s39_s28, 512  ;;  %p3376_p4 = scmp.lt.s32.totalorder %s39_s28, %s39_s28 }
   0xc   :  { %p3372_p3 = scmp.ne.s32.totalorder %s39_s28, %s3371_s16  ;;  %p3377_p5 = scmp.lt.s32.totalorder %s3371_s16, %s3371_s16 }
   0xe   :  { %p3378_p6 = por %p3377_p5, %p3376_p4 }
  0x10   :  { %p3379_p7 = pnand %p3378_p6, %p3372_p3 }
  0x12   :  { %3382 = shalt.err (!%p3379_p7)
}
  0x13   :  { %s3481_s17 = smov 128   ;;  %s3482_s18 = smov 8  }
  0x14   :  { %44 = dma.hbm_to_vmem [thread:$0]  %s3956_s3, 512, %s39_s28, [#allocation10], %s3481_s17, %s3481_s17, %s3482_s18  }
  0x15   :  { %s3383_s23 = scalar_lea.hbm %s3953_s0, 256 }
  0x16   :  { %p3384_p8 = scmp.ne.s32.totalorder %s3953_s0, %s3383_s23  ;;  %p3387_p9 = scmp.lt.u32.totalorder %s3383_s23, %s3953_s0 }
  0x18   :  { %p3389_p10 = pnand %p3387_p9, %p3384_p8 }
  0x1a   :  { %3392 = shalt.err (!%p3389_p10)
}
  0x1b   :  { %s3393_s29 = scalar_lea.vmem %s3536_s30, 256  ;;  %p3398_p12 = scmp.lt.s32.totalorder %s3536_s30, %s3536_s30 }
  0x1c   :  { %p3394_p11 = scmp.ne.s32.totalorder %s3536_s30, %s3393_s29  ;;  %p3399_p13 = scmp.lt.s32.totalorder %s3393_s29, %s3393_s29 }
  0x1e   :  { %p3400_p0 = por %p3399_p13, %p3398_p12 }
  0x20   :  { %p3401_p1 = pnand %p3400_p0, %p3394_p11 }
  0x22   :  { %3404 = shalt.err (!%p3401_p1)
}
  0x23   :  { %28 = dma.hbm_to_vmem [thread:$0]  %s3953_s0, 256, %s3536_s30, [#allocation7], %s3481_s17, %s3481_s17, %s3482_s18  }
  0x24   :  { %s3483_s9 = smov [#allocation11]   ;;  %s3484_s11 = smov [#allocation12]  }
  0x25   :  { %s50_s10 = sshll.u32 %s3483_s9, 4  ;;  %s62_s12 = sshll.u32 %s3484_s11, 4  ;;  %s51_s10 = int_to_ptr.vmem [resolvable:$true] %s50_s10  ;;  %s3573_s12 = int_to_ptr.vmem [resolvable:$true] %s62_s12 }
  0x26   :  { %s3405_s15 = scalar_lea.hbm %s3957_s4, 512 }
  0x27   :  { %p3406_p2 = scmp.ne.s32.totalorder %s3957_s4, %s3405_s15  ;;  %p3409_p3 = scmp.lt.u32.totalorder %s3405_s15, %s3957_s4 }
  0x29   :  { %p3411_p4 = pnand %p3409_p3, %p3406_p2 }
  0x2b   :  { %3414 = shalt.err (!%p3411_p4)
}
  0x2c   :  { %s3415_s0 = scalar_lea.vmem %s51_s10, 512  ;;  %p3420_p6 = scmp.lt.s32.totalorder %s51_s10, %s51_s10 }
  0x2d   :  { %p3416_p5 = scmp.ne.s32.totalorder %s51_s10, %s3415_s0  ;;  %p3421_p7 = scmp.lt.s32.totalorder %s3415_s0, %s3415_s0 }
  0x2f   :  { %p3422_p8 = por %p3421_p7, %p3420_p6 }
  0x31   :  { %p3423_p9 = pnand %p3422_p8, %p3416_p5 }
  0x33   :  { %3426 = shalt.err (!%p3423_p9)
}
  0x34   :  { %56 = dma.hbm_to_vmem [thread:$0]  %s3957_s4, 512, %s51_s10, [#allocation10], %s3481_s17, %s3481_s17, %s3482_s18  }
  0x35   :  { %s3427_s25 = scalar_lea.hbm %s3958_s5, 512 }
  0x36   :  { %p3428_p10 = scmp.ne.s32.totalorder %s3958_s5, %s3427_s25  ;;  %p3431_p11 = scmp.lt.u32.totalorder %s3427_s25, %s3958_s5 }
  0x38   :  { %p3433_p12 = pnand %p3431_p11, %p3428_p10 }
  0x3a   :  { %3436 = shalt.err (!%p3433_p12)
}
  0x3b   :  { %s3437_s28 = scalar_lea.vmem %s3573_s12, 512  ;;  %p3442_p0 = scmp.lt.s32.totalorder %s3573_s12, %s3573_s12 }
  0x3c   :  { %p3438_p13 = scmp.ne.s32.totalorder %s3573_s12, %s3437_s28  ;;  %p3443_p1 = scmp.lt.s32.totalorder %s3437_s28, %s3437_s28 }
  0x3e   :  { %p3444_p2 = por %p3443_p1, %p3442_p0 }
  0x40   :  { %p3445_p3 = pnand %p3444_p2, %p3438_p13 }
  0x42   :  { %3448 = shalt.err (!%p3445_p3)
}
  0x43   :  { %68 = dma.hbm_to_vmem [thread:$0]  %s3958_s5, 512, %s3573_s12, [#allocation13], %s3481_s17, %s3481_s17, %s3482_s18  }
  0x44   :  { %3471 = dma.done.wait [#allocation7], 256  }
  0x45   :  { %3472 = vsyncadd [#allocation7], 4294967040 }
  0x46   :  { %3473 = dma.done.wait [#allocation10], 1024  }
  0x47   :  { %3474 = vsyncadd [#allocation10], 4294966272 }
  0x48   :  { %3475 = dma.done.wait [#allocation13], 512  }
  0x49   :  { %3476 = vsyncadd [#allocation13], 4294966784  ;;  %v3485_v0 = vmov 0.0|0.0   ;;  %vm3486_vm0 = vmmov 0   ;;  %v3487_v1 = vmov 0.0   ;;  %vm98_vm1 = vcmask 261120  }
  0x4a   :  { %3036 = vmatprep.subr.bf16.mxu1 %v3485_v0  ;;  %2761 = vmatprep.mubr.msk.f32.mxu1 %vm3486_vm0, %v3487_v1  ;;  %v87_v2 = vld [vmem:[%s3954_s1] sm:$0xff]  ;;  %v88_v3 = vld [vmem:[%s3954_s1 + $0x8] sm:$0xff]  ;;  %v89_v4 = vld [vmem:[%s3954_s1 + $0x10] sm:$0xff]  ;;  %s3488_s20 = smov 64   ;;  %s3489_s21 = smov 96   ;;  %vm496_vm2 = vcmask 253952  }
  0x4b   :  { %v3028_v5 = vpack.c.bf16 %v88_v3, %v87_v2  ;;  %v90_v6 = vld [vmem:[%s3954_s1 + $0x18] sm:$0xff]  ;;  %v85_v7 = vld [vmem:[#allocation6] sm:$0xff]  ;;  %v200_v9 = vld [vmem:[#allocation9] sm:$0xff]  ;;  %vm502_vm3 = vcmask 1041409   ;;  %vm2529_vm4 = vcmask 64512  }
  0x4c   :  { %v3032_v8 = vpack.c.bf16 %v90_v6, %v89_v4  ;;  %2750 = vmatprep.mubr.msk.f32.mxu0 %vm98_vm1, %v85_v7  ;;  %v201_v10 = vld [vmem:[#allocation9 + $0x8] sm:$0xff]  ;;  %v202_v11 = vld [vmem:[#allocation9 + $0x10] sm:$0xff]  ;;  %v203_v13 = vld [vmem:[#allocation9 + $0x18] sm:$0xff] }
  0x4d   :  { %3029 = vmatprep.subr.bf16.mxu0 %v3028_v5  ;;  %v3626_v12 = vpack.c.bf16 %v201_v10, %v200_v9  ;;  %v3629_v14 = vpack.c.bf16 %v203_v13, %v202_v11  ;;  %v204_v15 = vld [vmem:[#allocation11] sm:$0xff]  ;;  %v205_v16 = vld [vmem:[#allocation11 + $0x8] sm:$0xff]  ;;  %v86_v19 = vld [vmem:[#allocation6 + $0x8] sm:$0xff] }
  0x4e   :  { %3031 = vmatpush3.bf16.msra.mxu0 %v3028_v5  ;;  %v208_v17 = vld [vmem:[#allocation12] sm:$0xff]  ;;  %v209_v18 = vld [vmem:[#allocation12 + $0x8] sm:$0xff]  ;;  %v3632_v20 = vpack.c.bf16 %v205_v16, %v204_v15  ;;  %v206_v22 = vld [vmem:[#allocation11 + $0x10] sm:$0xff] }
  0x4f   :  { %3033 = vmatprep.subr.bf16.mxu0 %v3032_v8  ;;  %3038 = vmatpush3.bf16.msra.mxu1 %v3626_v12  ;;  %v3635_v21 = vpack.c.bf16 %v209_v18, %v208_v17  ;;  %v207_v23 = vld [vmem:[#allocation11 + $0x18] sm:$0xff]  ;;  %v210_v24 = vld [vmem:[#allocation12 + $0x10] sm:$0xff] }
  0x50   :  { %3039 = vmatprep.subr.bf16.mxu1 %v3485_v0  ;;  %v211_v25 = vld [vmem:[#allocation12 + $0x18] sm:$0xff]  ;;  %v3642_v26 = vpack.c.bf16 %v207_v23, %v206_v22  ;;  %v2551_v28 = vld [vmem:[%s3955_s2] ss:$0 sm:$0xff] }
  0x51   :  { %v3645_v27 = vpack.c.bf16 %v211_v25, %v210_v24  ;;  %v3679_v50 = vld [vmem:[%s3959_s6] ss:$0 sm:$0xff] }
  0x52   :  { %3035 = vmatpush3.bf16.msra.mxu0 %v3032_v8 }
  0x53   :  { %3041 = vmatpush3.bf16.msra.mxu1 %v3629_v14  ;;  %3042 = vmatprep.subr.bf16.mxu0 %v3485_v0 }
  0x54   :  { %3048 = vmatprep.subr.bf16.mxu1 %v3485_v0 }
  0x55   :  { %2751 = vmatmul.mubr.msk.f32.vlgmr.msra.gmra.mrb[0].mxu0 %vm98_vm1, %v86_v19 }
  0x56   :  { %2762 = vmatmul.mubr.f32.vlgmr.msra.gmra.mrb[0].mxu1 %v3487_v1  ;;  %3044 = vmatpush3.bf16.msra.mxu0 %v3632_v20 }
  0x57   :  { %3050 = vmatpush3.bf16.msra.mxu1 %v3635_v21  ;;  %2783 = vmatprep.mubr.msk.f32.mxu1 %vm3486_vm0, %v3487_v1 }
  0x58   :  { %3051 = vmatprep.subr.bf16.mxu1 %v3485_v0  ;;  %3045 = vmatprep.subr.bf16.mxu0 %v3485_v0 }
  0x59   :  { %2772 = vmatprep.mubr.msk.f32.mxu0 %vm3486_vm0, %v3487_v1 }
  0x5a   :  { %3047 = vmatpush3.bf16.msra.mxu0 %v3642_v26 }
  0x5b   :  { %3053 = vmatpush3.bf16.msra.mxu1 %v3645_v27  ;;  %3054 = vmatprep.subr.bf16.mxu0 %v3485_v0 }
  0x5c   :  { %3060 = vmatprep.subr.bf16.mxu1 %v3485_v0 }
  0x5d   :  { %2773 = vmatmul.mubr.f32.vlgmr.msra.gmra.mrb[2].mxu0 %v3487_v1 }
  0x5e   :  { %2784 = vmatmul.mubr.f32.vlgmr.msra.gmra.mrb[2].mxu1 %v3487_v1  ;;  %3056 = vmatpush3.bf16.msra.mxu0 %v3626_v12 }
  0x5f   :  { %3062 = vmatpush3.bf16.msra.mxu1 %v3632_v20  ;;  %3057 = vmatprep.subr.bf16.mxu0 %v3485_v0 }
  0x60   :  { %3063 = vmatprep.subr.bf16.mxu1 %v3485_v0  ;;  %2794 = vmatprep.mubr.msk.f32.mxu0 %vm3486_vm0, %v3487_v1 }
  0x61   :  { %2805 = vmatprep.mubr.msk.f32.mxu1 %vm3486_vm0, %v3487_v1 }
  0x62   :  { %3059 = vmatpush3.bf16.msra.mxu0 %v3629_v14 }
  0x63   :  { %3065 = vmatpush3.bf16.msra.mxu1 %v3642_v26  ;;  %3066 = vmatprep.subr.bf16.mxu0 %v3485_v0 }
  0x64   :  { %3072 = vmatprep.subr.bf16.mxu1 %v3485_v0 }
 0x128   :  { %v2752_v29 = vpop.f32.mrb[0].mxu0 }
 0x129   :  { %v177_v30 = vadd.f32 %v2752_v29, %v2551_v28  ;;  %v171_v31 = vpop.f32.mrb[1].mxu0  ;;  %v292_v32 = vpop.f32.mrb[0].mxu1 }
 0x12a   :  { %v172_v33 = vadd.f32 %v2551_v28, %v171_v31  ;;  %v2763_v34 = vpop.f32.mrb[1].mxu1  ;;  %v439_v35 = vrot.slane %v292_v32, 1 }
 0x12b   :  { %181 = vst.msk [vmem:[#allocation2 + $0x8] sm:$0xff] %vm98_vm1, %v177_v30  ;;  %194 = vrot.lane.b32.xlu1 %v177_v30, %s3488_s20  ;;  %186 = vrot.lane.b32.xlu0 %v177_v30, %s3489_s21 }
 0x12c   :  { %180 = vst.msk [vmem:[#allocation2] sm:$0xff] %vm98_vm1, %v172_v33 }
 0x12f   :  { %192 = vrot.lane.b32.xlu1 %v172_v33, %s3488_s20  ;;  %184 = vrot.lane.b32.xlu0 %v172_v33, %s3489_s21 }
 0x130   :  { %v362_v36 = vpop.f32.mrb[2].mxu0 }
 0x131   :  { %v432_v37 = vpop.f32.mrb[2].mxu1  ;;  %v2774_v38 = vpop.f32.mrb[3].mxu0  ;;  %v459_v61 = vrot.slane %v362_v36, 1 }
 0x132   :  { %v437_v39 = vld [vmem:[#allocation2 + $0x8] sm:$0x1]  ;;  %v2785_v40 = vpop.f32.mrb[3].mxu1  ;;  %v433_v51 = vadd.f32 %v3679_v50, %v432_v37 }
 0x133   :  { %v436_v41 = vld [vmem:[#allocation2] sm:$0x1]  ;;  %v443_v42 = vadd.f32 %v439_v35, %v437_v39  ;;  %v716_v35 = vld [vmem:[#allocation2 + $0x1] sm:$0x1] }
 0x134   :  { %v442_v43 = vadd.f32 %v436_v41, %v292_v32  ;;  %v479_v52 = vrot.slane %v433_v51, 1  ;;  %v717_v41 = vld [vmem:[#allocation2 + $0x9] sm:$0x1] }
 0x135   :  { %v2556_v44 = vmul.f32 -1.442695, %v443_v42 }
 0x136   :  { %v2555_v45 = vmul.f32 -1.442695, %v442_v43 }
 0x137   :  { %3200 = vpow2.f32 %v2556_v44 }
 0x138   :  { %3202 = vpow2.f32 %v2555_v45 }
 0x141   :  { %v3201_v46 = vpop.eup %3200 }
 0x142   :  { %v3203_v47 = vpop.eup %3202  ;;  %v451_v48 = vadd.f32 1.0, %v3201_v46 }
 0x143   :  { %v450_v49 = vadd.f32 1.0, %v3203_v47 }
 0x144   :  { %3204 = vrcp.f32 %v451_v48 }
 0x145   :  { %3206 = vrcp.f32 %v450_v49 }
 0x14e   :  { %v3205_v53 = vpop.eup %3204 }
 0x14f   :  { %v3207_v54 = vpop.eup %3206  ;;  %v483_v55 = vmul.f32 %v3205_v53, %v479_v52 }
 0x150   :  { %v482_v56 = vmul.f32 %v3207_v54, %v433_v51 }
 0x19d   :  { %v195_v57 = vpop.permute.xlu1 %194  ;;  %v187_v58 = vpop.permute.xlu0 %186 }
 0x19e   :  { %199 = vst.msk [vmem:[#allocation4 + $0x8] sm:$0xff] %vm98_vm1, %v195_v57  ;;  %191 = vst.msk [vmem:[#allocation3 + $0x8] sm:$0xff] %vm98_vm1, %v187_v58 }
 0x1a1   :  { %v193_v59 = vpop.permute.xlu1 %192  ;;  %v185_v60 = vpop.permute.xlu0 %184 }
 0x1a2   :  { %198 = vst.msk [vmem:[#allocation4] sm:$0xff] %vm98_vm1, %v193_v59  ;;  %190 = vst.msk [vmem:[#allocation3] sm:$0xff] %vm98_vm1, %v185_v60 }
 0x1a5   :  { %v457_v62 = vld [vmem:[#allocation3 + $0x8] sm:$0x1]  ;;  %v477_v6 = vld [vmem:[#allocation4 + $0x8] sm:$0x1]  ;;  %v737_v48 = vld [vmem:[#allocation3 + $0x9] sm:$0x1] }
 0x1a6   :  { %v463_v63 = vadd.f32 %v459_v61, %v457_v62  ;;  %v485_v9 = vadd.f32 %v483_v55, %v477_v6 }
 0x1a8   :  { %v2558_v2 = vmul.f32 -1.442695, %v463_v63 }
 0x1a9   :  { %v456_v3 = vld [vmem:[#allocation3] sm:$0x1]  ;;  %v476_v10 = vld [vmem:[#allocation4] sm:$0x1]  ;;  %v736_v45 = vld [vmem:[#allocation3 + $0x1] sm:$0x1] }
 0x1aa   :  { %v462_v4 = vadd.f32 %v456_v3, %v362_v36  ;;  %3208 = vpow2.f32 %v2558_v2  ;;  %v484_v15 = vadd.f32 %v482_v56, %v476_v10  ;;  %v756_v6 = vld [vmem:[#allocation4 + $0x1] sm:$0x1] }
 0x1ac   :  { %v2557_v5 = vmul.f32 -1.442695, %v462_v4 }
 0x1ae   :  { %3210 = vpow2.f32 %v2557_v5 }
 0x1b4   :  { %v3209_v7 = vpop.eup %3208 }
 0x1b5   :  { %v471_v8 = vadd.f32 1.0, %v3209_v7 }
 0x1b7   :  { %3212 = vrcp.f32 %v471_v8 }
 0x1b8   :  { %v3211_v11 = vpop.eup %3210  ;;  %3214 = vtanh.f32 %v485_v9  ;;  %v757_v9 = vld [vmem:[#allocation4 + $0x9] sm:$0x1] }
 0x1b9   :  { %v470_v13 = vadd.f32 1.0, %v3211_v11 }
 0x1bb   :  { %3216 = vrcp.f32 %v470_v13 }
 0x1bc   :  { %3218 = vtanh.f32 %v484_v15 }
 0x1c1   :  { %v3213_v16 = vpop.eup %3212 }
 0x1c2   :  { %v489_v17 = vsub.f32 1.0, %v3213_v16  ;;  %v3215_v18 = vpop.eup %3214  ;;  %v493_v22 = vmul.f32 0.0, %v3213_v16 }
 0x1c4   :  { %v491_v19 = vmul.f32 %v3215_v18, %v489_v17 }
 0x1c5   :  { %v3217_v23 = vpop.eup %3216 }
 0x1c6   :  { %v488_v24 = vsub.f32 1.0, %v3217_v23  ;;  %v3686_v25 = vadd.f32 %v493_v22, %v491_v19  ;;  %v3219_v28 = vpop.eup %3218  ;;  %v492_v30 = vmul.f32 0.0, %v3217_v23 }
 0x1c8   :  { %v490_v29 = vmul.f32 %v3219_v28, %v488_v24  ;;  %498 = vst.msk [vmem:[#allocation5 + $0x8] sm:$0x1] %vm496_vm2, %v3686_v25  ;;  %v501_v32 = vrot.slane %v3686_v25, 7 }
 0x1ca   :  { %v3690_v31 = vadd.f32 %v492_v30, %v490_v29 }
 0x1cc   :  { %497 = vst.msk [vmem:[#allocation5] sm:$0x1] %vm496_vm2, %v3690_v31  ;;  %v503_v33 = vsel %vm502_vm3, %v501_v32, %v3690_v31 }
 0x1cd   :  { %2795 = vmatmul.mubr.msk.f32.vlgmr.msra.gmra.mrb[4].mxu0 %vm98_vm1, %v503_v33  ;;  %2806 = vmatmul.mubr.msk.f32.vlgmr.msra.gmra.mrb[4].mxu1 %vm98_vm1, %v503_v33 }
 0x1ce   :  { %3068 = vmatpush3.bf16.msra.mxu0 %v3635_v21  ;;  %2816 = vmatprep.mubr.msk.f32.mxu0 %vm3486_vm0, %v3487_v1 }
 0x1cf   :  { %3069 = vmatprep.subr.bf16.mxu0 %v3485_v0  ;;  %3074 = vmatpush3.bf16.msra.mxu1 %v3626_v12 }
 0x1d0   :  { %3075 = vmatprep.subr.bf16.mxu1 %v3485_v0  ;;  %2827 = vmatprep.mubr.msk.f32.mxu1 %vm3486_vm0, %v3487_v1 }
 0x1d2   :  { %3071 = vmatpush3.bf16.msra.mxu0 %v3645_v27 }
 0x1d3   :  { %3078 = vmatprep.subr.bf16.mxu0 %v3485_v0  ;;  %3077 = vmatpush3.bf16.msra.mxu1 %v3629_v14 }
 0x1d4   :  { %3084 = vmatprep.subr.bf16.mxu1 %v3485_v0 }
 0x1d5   :  { %2817 = vmatmul.mubr.msk.f32.vlgmr.msra.gmra.mrb[6].mxu0 %vm98_vm1, %v503_v33 }
 0x1d6   :  { %3080 = vmatpush3.bf16.msra.mxu0 %v3632_v20  ;;  %2838 = vmatprep.mubr.msk.f32.mxu0 %vm3486_vm0, %v3487_v1 }
 0x1d7   :  { %3081 = vmatprep.subr.bf16.mxu0 %v3485_v0 }
 0x1da   :  { %3083 = vmatpush3.bf16.msra.mxu0 %v3642_v26 }
 0x1db   :  { %3090 = vmatprep.subr.bf16.mxu0 %v3485_v0 }
 0x2a0   :  { %v572_v34 = vpop.f32.mrb[4].mxu0  ;;  %v642_v36 = vpop.f32.mrb[4].mxu1 }
 0x2a1   :  { %v719_v37 = vrot.slane %v572_v34, 1  ;;  %v722_v38 = vadd.f32 %v716_v35, %v572_v34  ;;  %v2796_v39 = vpop.f32.mrb[5].mxu0  ;;  %v2807_v40 = vpop.f32.mrb[5].mxu1  ;;  %v739_v42 = vrot.slane %v642_v36, 1  ;;  %v742_v46 = vadd.f32 %v736_v45, %v642_v36  ;;  %v1015_v45 = vld [vmem:[#allocation3 + $0xa] sm:$0x1] }
 0x2a3   :  { %v723_v43 = vadd.f32 %v719_v37, %v717_v41  ;;  %v2562_v44 = vmul.f32 -1.442695, %v722_v38  ;;  %v743_v49 = vadd.f32 %v739_v42, %v737_v48  ;;  %v2564_v51 = vmul.f32 -1.442695, %v742_v46  ;;  %v995_v38 = vld [vmem:[#allocation2 + $0xa] sm:$0x1] }
 0x2a4   :  { %v1014_v42 = vld [vmem:[#allocation3 + $0x2] sm:$0x1] }
 0x2a5   :  { %3220 = vpow2.f32 %v2562_v44  ;;  %v2563_v47 = vmul.f32 -1.442695, %v723_v43  ;;  %v2565_v54 = vmul.f32 -1.442695, %v743_v49 }
 0x2a7   :  { %3222 = vpow2.f32 %v2563_v47 }
 0x2a8   :  { %v712_v52 = vpop.f32.mrb[6].mxu0  ;;  %3224 = vpow2.f32 %v2564_v51 }
 0x2a9   :  { %v2818_v53 = vpop.f32.mrb[7].mxu0  ;;  %3226 = vpow2.f32 %v2565_v54  ;;  %v713_v62 = vadd.f32 %v3679_v50, %v712_v52 }
 0x2ab   :  { %v759_v3 = vrot.slane %v713_v62, 1 }
 0x2af   :  { %v3221_v55 = vpop.eup %3220 }
 0x2b0   :  { %v730_v56 = vadd.f32 1.0, %v3221_v55 }
 0x2b1   :  { %v3223_v57 = vpop.eup %3222 }
 0x2b2   :  { %v731_v58 = vadd.f32 1.0, %v3223_v57  ;;  %3228 = vrcp.f32 %v730_v56  ;;  %v3225_v59 = vpop.eup %3224 }
 0x2b3   :  { %v3227_v60 = vpop.eup %3226  ;;  %v750_v61 = vadd.f32 1.0, %v3225_v59 }
 0x2b4   :  { %3230 = vrcp.f32 %v731_v58  ;;  %v751_v63 = vadd.f32 1.0, %v3227_v60 }
 0x2b5   :  { %3232 = vrcp.f32 %v750_v61 }
 0x2b6   :  { %3234 = vrcp.f32 %v751_v63 }
 0x2bc   :  { %v3229_v2 = vpop.eup %3228 }
 0x2bd   :  { %v762_v4 = vmul.f32 %v3229_v2, %v713_v62 }
 0x2be   :  { %v3231_v5 = vpop.eup %3230 }
 0x2bf   :  { %v763_v7 = vmul.f32 %v3231_v5, %v759_v3  ;;  %v764_v8 = vadd.f32 %v762_v4, %v756_v6  ;;  %v3233_v11 = vpop.eup %3232  ;;  %v1034_v3 = vld [vmem:[#allocation4 + $0x2] sm:$0x1]  ;;  %v1035_v6 = vld [vmem:[#allocation4 + $0xa] sm:$0x1] }
 0x2c0   :  { %v3235_v13 = vpop.eup %3234  ;;  %v768_v15 = vsub.f32 1.0, %v3233_v11  ;;  %v772_v19 = vmul.f32 %v3233_v11, %v3690_v31  ;;  %v994_v31 = vld [vmem:[#allocation2 + $0x2] sm:$0x1] }
 0x2c1   :  { %v765_v10 = vadd.f32 %v763_v7, %v757_v9  ;;  %3236 = vtanh.f32 %v764_v8  ;;  %v769_v17 = vsub.f32 1.0, %v3235_v13  ;;  %v773_v24 = vmul.f32 %v3235_v13, %v3686_v25 }
 0x2c3   :  { %3238 = vtanh.f32 %v765_v10 }
 0x2cb   :  { %v3237_v16 = vpop.eup %3236 }
 0x2cc   :  { %v770_v18 = vmul.f32 %v3237_v16, %v768_v15 }
 0x2cd   :  { %v3239_v22 = vpop.eup %3238 }
 0x2ce   :  { %v771_v23 = vmul.f32 %v3239_v22, %v769_v17  ;;  %v3721_v28 = vadd.f32 %v772_v19, %v770_v18 }
 0x2d0   :  { %v3723_v29 = vadd.f32 %v773_v24, %v771_v23  ;;  %776 = vst.msk [vmem:[#allocation5 + $0x1] sm:$0x1] %vm496_vm2, %v3721_v28 }
 0x2d2   :  { %777 = vst.msk [vmem:[#allocation5 + $0x9] sm:$0x1] %vm496_vm2, %v3723_v29  ;;  %v780_v30 = vrot.slane %v3723_v29, 7 }
 0x2d4   :  { %v781_v32 = vsel %vm502_vm3, %v780_v30, %v3721_v28 }
 0x2d5   :  { %2828 = vmatmul.mubr.msk.f32.vlgmr.msra.gmra.mrb[6].mxu1 %vm98_vm1, %v781_v32  ;;  %2839 = vmatmul.mubr.msk.f32.vlgmr.msra.gmra.mrb[8].mxu0 %vm98_vm1, %v781_v32 }
 0x2d6   :  { %3086 = vmatpush3.bf16.msra.mxu1 %v3635_v21  ;;  %2849 = vmatprep.mubr.msk.f32.mxu1 %vm3486_vm0, %v3487_v1 }
 0x2d7   :  { %3087 = vmatprep.subr.bf16.mxu1 %v3485_v0  ;;  %3092 = vmatpush3.bf16.msra.mxu0 %v3626_v12 }
 0x2d8   :  { %3093 = vmatprep.subr.bf16.mxu0 %v3485_v0  ;;  %2860 = vmatprep.mubr.msk.f32.mxu0 %vm3486_vm0, %v3487_v1 }
 0x2da   :  { %3089 = vmatpush3.bf16.msra.mxu1 %v3645_v27 }
 0x2db   :  { %3096 = vmatprep.subr.bf16.mxu1 %v3485_v0  ;;  %3095 = vmatpush3.bf16.msra.mxu0 %v3629_v14 }
 0x2dc   :  { %3102 = vmatprep.subr.bf16.mxu0 %v3485_v0 }
 0x2dd   :  { %2850 = vmatmul.mubr.msk.f32.vlgmr.msra.gmra.mrb[8].mxu1 %vm98_vm1, %v781_v32 }
 0x2de   :  { %3098 = vmatpush3.bf16.msra.mxu1 %v3632_v20  ;;  %2871 = vmatprep.mubr.msk.f32.mxu1 %vm3486_vm0, %v3487_v1 }
 0x2df   :  { %3099 = vmatprep.subr.bf16.mxu1 %v3485_v0 }
 0x2e2   :  { %3101 = vmatpush3.bf16.msra.mxu1 %v3642_v26 }
 0x2e3   :  { %3108 = vmatprep.subr.bf16.mxu1 %v3485_v0 }
 0x3a8   :  { %v850_v25 = vpop.f32.mrb[6].mxu1  ;;  %v920_v33 = vpop.f32.mrb[8].mxu0 }
 0x3a9   :  { %v997_v34 = vrot.slane %v850_v25, 1  ;;  %v1000_v35 = vadd.f32 %v994_v31, %v850_v25  ;;  %v2829_v36 = vpop.f32.mrb[7].mxu1  ;;  %v2840_v37 = vpop.f32.mrb[9].mxu0  ;;  %v1017_v39 = vrot.slane %v920_v33, 1  ;;  %v1020_v43 = vadd.f32 %v1014_v42, %v920_v33  ;;  %v1293_v42 = vld [vmem:[#allocation3 + $0xb] sm:$0x1] }
 0x3ab   :  { %v1001_v40 = vadd.f32 %v997_v34, %v995_v38  ;;  %v2569_v41 = vmul.f32 -1.442695, %v1000_v35  ;;  %v1021_v46 = vadd.f32 %v1017_v39, %v1015_v45  ;;  %v2571_v47 = vmul.f32 -1.442695, %v1020_v43  ;;  %v1273_v35 = vld [vmem:[#allocation2 + $0xb] sm:$0x1] }
 0x3ac   :  { %v1292_v39 = vld [vmem:[#allocation3 + $0x3] sm:$0x1] }
 0x3ad   :  { %3240 = vpow2.f32 %v2569_v41  ;;  %v2570_v44 = vmul.f32 -1.442695, %v1001_v40  ;;  %v2572_v51 = vmul.f32 -1.442695, %v1021_v46 }
 0x3af   :  { %3242 = vpow2.f32 %v2570_v44 }
 0x3b0   :  { %v990_v48 = vpop.f32.mrb[8].mxu1  ;;  %3244 = vpow2.f32 %v2571_v47 }
 0x3b1   :  { %v2851_v49 = vpop.f32.mrb[9].mxu1  ;;  %3246 = vpow2.f32 %v2572_v51  ;;  %v991_v59 = vadd.f32 %v3679_v50, %v990_v48 }
 0x3b3   :  { %v1037_v62 = vrot.slane %v991_v59, 1 }
 0x3b7   :  { %v3241_v52 = vpop.eup %3240 }
 0x3b8   :  { %v1008_v53 = vadd.f32 1.0, %v3241_v52 }
 0x3b9   :  { %v3243_v54 = vpop.eup %3242 }
 0x3ba   :  { %v1009_v55 = vadd.f32 1.0, %v3243_v54  ;;  %3248 = vrcp.f32 %v1008_v53  ;;  %v3245_v56 = vpop.eup %3244 }
 0x3bb   :  { %v3247_v57 = vpop.eup %3246  ;;  %v1028_v58 = vadd.f32 1.0, %v3245_v56 }
 0x3bc   :  { %3250 = vrcp.f32 %v1009_v55  ;;  %v1029_v60 = vadd.f32 1.0, %v3247_v57 }
 0x3bd   :  { %3252 = vrcp.f32 %v1028_v58 }
 0x3be   :  { %3254 = vrcp.f32 %v1029_v60 }
 0x3c4   :  { %v3249_v61 = vpop.eup %3248 }
 0x3c5   :  { %v1040_v63 = vmul.f32 %v3249_v61, %v991_v59 }
 0x3c6   :  { %v3251_v2 = vpop.eup %3250 }
 0x3c7   :  { %v1041_v4 = vmul.f32 %v3251_v2, %v1037_v62  ;;  %v1042_v5 = vadd.f32 %v1040_v63, %v1034_v3  ;;  %v3253_v8 = vpop.eup %3252  ;;  %v1312_v62 = vld [vmem:[#allocation4 + $0x3] sm:$0x1]  ;;  %v1313_v3 = vld [vmem:[#allocation4 + $0xb] sm:$0x1] }
 0x3c8   :  { %v3255_v9 = vpop.eup %3254  ;;  %v1046_v10 = vsub.f32 1.0, %v3253_v8  ;;  %v1050_v16 = vmul.f32 %v3253_v8, %v3721_v28 }
 0x3c9   :  { %v1043_v7 = vadd.f32 %v1041_v4, %v1035_v6  ;;  %3256 = vtanh.f32 %v1042_v5  ;;  %v1047_v13 = vsub.f32 1.0, %v3255_v9  ;;  %v1051_v19 = vmul.f32 %v3255_v9, %v3723_v29  ;;  %v1272_v29 = vld [vmem:[#allocation2 + $0x3] sm:$0x1] }
 0x3cb   :  { %3258 = vtanh.f32 %v1043_v7 }
 0x3d3   :  { %v3257_v11 = vpop.eup %3256 }
 0x3d4   :  { %v1048_v15 = vmul.f32 %v3257_v11, %v1046_v10 }
 0x3d5   :  { %v3259_v17 = vpop.eup %3258 }
 0x3d6   :  { %v1049_v18 = vmul.f32 %v3259_v17, %v1047_v13  ;;  %v3756_v22 = vadd.f32 %v1050_v16, %v1048_v15 }
 0x3d8   :  { %v3758_v23 = vadd.f32 %v1051_v19, %v1049_v18  ;;  %1054 = vst.msk [vmem:[#allocation5 + $0x2] sm:$0x1] %vm496_vm2, %v3756_v22 }
 0x3da   :  { %1055 = vst.msk [vmem:[#allocation5 + $0xa] sm:$0x1] %vm496_vm2, %v3758_v23  ;;  %v1058_v24 = vrot.slane %v3758_v23, 7 }
 0x3dc   :  { %v1059_v30 = vsel %vm502_vm3, %v1058_v24, %v3756_v22 }
 0x3dd   :  { %2861 = vmatmul.mubr.msk.f32.vlgmr.msra.gmra.mrb[10].mxu0 %vm98_vm1, %v1059_v30  ;;  %2872 = vmatmul.mubr.msk.f32.vlgmr.msra.gmra.mrb[10].mxu1 %vm98_vm1, %v1059_v30 }
 0x3de   :  { %3104 = vmatpush3.bf16.msra.mxu0 %v3635_v21  ;;  %2882 = vmatprep.mubr.msk.f32.mxu0 %vm3486_vm0, %v3487_v1 }
 0x3df   :  { %3105 = vmatprep.subr.bf16.mxu0 %v3485_v0  ;;  %3110 = vmatpush3.bf16.msra.mxu1 %v3626_v12 }
 0x3e0   :  { %3111 = vmatprep.subr.bf16.mxu1 %v3485_v0  ;;  %2893 = vmatprep.mubr.msk.f32.mxu1 %vm3486_vm0, %v3487_v1 }
 0x3e2   :  { %3107 = vmatpush3.bf16.msra.mxu0 %v3645_v27 }
 0x3e3   :  { %3114 = vmatprep.subr.bf16.mxu0 %v3485_v0  ;;  %3113 = vmatpush3.bf16.msra.mxu1 %v3629_v14 }
 0x3e4   :  { %3120 = vmatprep.subr.bf16.mxu1 %v3485_v0 }
 0x3e5   :  { %2883 = vmatmul.mubr.msk.f32.vlgmr.msra.gmra.mrb[12].mxu0 %vm98_vm1, %v1059_v30 }
 0x3e6   :  { %3116 = vmatpush3.bf16.msra.mxu0 %v3632_v20  ;;  %2904 = vmatprep.mubr.msk.f32.mxu0 %vm3486_vm0, %v3487_v1 }
 0x3e7   :  { %3117 = vmatprep.subr.bf16.mxu0 %v3485_v0 }
 0x3ea   :  { %3119 = vmatpush3.bf16.msra.mxu0 %v3642_v26 }
 0x3eb   :  { %3126 = vmatprep.subr.bf16.mxu0 %v3485_v0 }
 0x4b0   :  { %v1128_v28 = vpop.f32.mrb[10].mxu0  ;;  %v1198_v32 = vpop.f32.mrb[10].mxu1 }
 0x4b1   :  { %v1275_v25 = vrot.slane %v1128_v28, 1  ;;  %v1278_v31 = vadd.f32 %v1272_v29, %v1128_v28  ;;  %v2862_v33 = vpop.f32.mrb[11].mxu0  ;;  %v2873_v34 = vpop.f32.mrb[11].mxu1  ;;  %v1295_v36 = vrot.slane %v1198_v32, 1  ;;  %v1298_v40 = vadd.f32 %v1292_v39, %v1198_v32  ;;  %v1571_v39 = vld [vmem:[#allocation3 + $0xc] sm:$0x1] }
 0x4b3   :  { %v1279_v37 = vadd.f32 %v1275_v25, %v1273_v35  ;;  %v2576_v38 = vmul.f32 -1.442695, %v1278_v31  ;;  %v1299_v43 = vadd.f32 %v1295_v36, %v1293_v42  ;;  %v2578_v44 = vmul.f32 -1.442695, %v1298_v40  ;;  %v1551_v31 = vld [vmem:[#allocation2 + $0xc] sm:$0x1] }
 0x4b4   :  { %v1570_v36 = vld [vmem:[#allocation3 + $0x4] sm:$0x1] }
 0x4b5   :  { %3260 = vpow2.f32 %v2576_v38  ;;  %v2577_v41 = vmul.f32 -1.442695, %v1279_v37  ;;  %v2579_v47 = vmul.f32 -1.442695, %v1299_v43 }
 0x4b7   :  { %3262 = vpow2.f32 %v2577_v41 }
 0x4b8   :  { %v1268_v45 = vpop.f32.mrb[12].mxu0  ;;  %3264 = vpow2.f32 %v2578_v44 }
 0x4b9   :  { %v2884_v46 = vpop.f32.mrb[13].mxu0  ;;  %3266 = vpow2.f32 %v2579_v47  ;;  %v1269_v56 = vadd.f32 %v3679_v50, %v1268_v45 }
 0x4bb   :  { %v1315_v59 = vrot.slane %v1269_v56, 1 }
 0x4bf   :  { %v3261_v48 = vpop.eup %3260 }
 0x4c0   :  { %v1286_v49 = vadd.f32 1.0, %v3261_v48 }
 0x4c1   :  { %v3263_v51 = vpop.eup %3262 }
 0x4c2   :  { %v1287_v52 = vadd.f32 1.0, %v3263_v51  ;;  %3268 = vrcp.f32 %v1286_v49  ;;  %v3265_v53 = vpop.eup %3264 }
 0x4c3   :  { %v3267_v54 = vpop.eup %3266  ;;  %v1306_v55 = vadd.f32 1.0, %v3265_v53 }
 0x4c4   :  { %3270 = vrcp.f32 %v1287_v52  ;;  %v1307_v57 = vadd.f32 1.0, %v3267_v54 }
 0x4c5   :  { %3272 = vrcp.f32 %v1306_v55 }
 0x4c6   :  { %3274 = vrcp.f32 %v1307_v57 }
 0x4cc   :  { %v3269_v58 = vpop.eup %3268 }
 0x4cd   :  { %v1318_v60 = vmul.f32 %v3269_v58, %v1269_v56 }
 0x4ce   :  { %v3271_v61 = vpop.eup %3270 }
 0x4cf   :  { %v1319_v63 = vmul.f32 %v3271_v61, %v1315_v59  ;;  %v1320_v2 = vadd.f32 %v1318_v60, %v1312_v62  ;;  %v3273_v5 = vpop.eup %3272  ;;  %v1590_v59 = vld [vmem:[#allocation4 + $0x4] sm:$0x1]  ;;  %v1591_v62 = vld [vmem:[#allocation4 + $0xc] sm:$0x1] }
 0x4d0   :  { %v3275_v6 = vpop.eup %3274  ;;  %v1324_v7 = vsub.f32 1.0, %v3273_v5  ;;  %v1328_v11 = vmul.f32 %v3273_v5, %v3756_v22 }
 0x4d1   :  { %v1321_v4 = vadd.f32 %v1319_v63, %v1313_v3  ;;  %3276 = vtanh.f32 %v1320_v2  ;;  %v1325_v9 = vsub.f32 1.0, %v3275_v6  ;;  %v1329_v16 = vmul.f32 %v3275_v6, %v3758_v23  ;;  %v1550_v23 = vld [vmem:[#allocation2 + $0x4] sm:$0x1] }
 0x4d3   :  { %3278 = vtanh.f32 %v1321_v4 }
 0x4db   :  { %v3277_v8 = vpop.eup %3276 }
 0x4dc   :  { %v1326_v10 = vmul.f32 %v3277_v8, %v1324_v7 }
 0x4dd   :  { %v3279_v13 = vpop.eup %3278 }
 0x4de   :  { %v1327_v15 = vmul.f32 %v3279_v13, %v1325_v9  ;;  %v3791_v17 = vadd.f32 %v1328_v11, %v1326_v10 }
 0x4e0   :  { %v3793_v18 = vadd.f32 %v1329_v16, %v1327_v15  ;;  %1332 = vst.msk [vmem:[#allocation5 + $0x3] sm:$0x1] %vm496_vm2, %v3791_v17 }
 0x4e2   :  { %1333 = vst.msk [vmem:[#allocation5 + $0xb] sm:$0x1] %vm496_vm2, %v3793_v18  ;;  %v1336_v19 = vrot.slane %v3793_v18, 7 }
 0x4e4   :  { %v1337_v24 = vsel %vm502_vm3, %v1336_v19, %v3791_v17 }
 0x4e5   :  { %2894 = vmatmul.mubr.msk.f32.vlgmr.msra.gmra.mrb[12].mxu1 %vm98_vm1, %v1337_v24  ;;  %2905 = vmatmul.mubr.msk.f32.vlgmr.msra.gmra.mrb[14].mxu0 %vm98_vm1, %v1337_v24 }
 0x4e6   :  { %3122 = vmatpush3.bf16.msra.mxu1 %v3635_v21  ;;  %2915 = vmatprep.mubr.msk.f32.mxu1 %vm3486_vm0, %v3487_v1 }
 0x4e7   :  { %3123 = vmatprep.subr.bf16.mxu1 %v3485_v0  ;;  %3128 = vmatpush3.bf16.msra.mxu0 %v3626_v12 }
 0x4e8   :  { %3129 = vmatprep.subr.bf16.mxu0 %v3485_v0  ;;  %2926 = vmatprep.mubr.msk.f32.mxu0 %vm3486_vm0, %v3487_v1 }
 0x4ea   :  { %3125 = vmatpush3.bf16.msra.mxu1 %v3645_v27 }
 0x4eb   :  { %3132 = vmatprep.subr.bf16.mxu1 %v3485_v0  ;;  %3131 = vmatpush3.bf16.msra.mxu0 %v3629_v14 }
 0x4ec   :  { %3138 = vmatprep.subr.bf16.mxu0 %v3485_v0 }
 0x4ed   :  { %2916 = vmatmul.mubr.msk.f32.vlgmr.msra.gmra.mrb[14].mxu1 %vm98_vm1, %v1337_v24 }
 0x4ee   :  { %3134 = vmatpush3.bf16.msra.mxu1 %v3632_v20  ;;  %2937 = vmatprep.mubr.msk.f32.mxu1 %vm3486_vm0, %v3487_v1 }
 0x4ef   :  { %3135 = vmatprep.subr.bf16.mxu1 %v3485_v0 }
 0x4f2   :  { %3137 = vmatpush3.bf16.msra.mxu1 %v3642_v26 }
 0x4f3   :  { %3144 = vmatprep.subr.bf16.mxu1 %v3485_v0 }
 0x5b8   :  { %v1406_v22 = vpop.f32.mrb[12].mxu1  ;;  %v1476_v30 = vpop.f32.mrb[14].mxu0 }
 0x5b9   :  { %v1553_v28 = vrot.slane %v1406_v22, 1  ;;  %v1556_v29 = vadd.f32 %v1550_v23, %v1406_v22  ;;  %v2895_v32 = vpop.f32.mrb[13].mxu1  ;;  %v2906_v25 = vpop.f32.mrb[15].mxu0  ;;  %v1573_v33 = vrot.slane %v1476_v30, 1  ;;  %v1576_v37 = vadd.f32 %v1570_v36, %v1476_v30  ;;  %v1849_v36 = vld [vmem:[#allocation3 + $0xd] sm:$0x1] }
 0x5bb   :  { %v1557_v34 = vadd.f32 %v1553_v28, %v1551_v31  ;;  %v2583_v35 = vmul.f32 -1.442695, %v1556_v29  ;;  %v1577_v40 = vadd.f32 %v1573_v33, %v1571_v39  ;;  %v2585_v41 = vmul.f32 -1.442695, %v1576_v37  ;;  %v1829_v29 = vld [vmem:[#allocation2 + $0xd] sm:$0x1] }
 0x5bc   :  { %v1848_v33 = vld [vmem:[#allocation3 + $0x5] sm:$0x1] }
 0x5bd   :  { %3280 = vpow2.f32 %v2583_v35  ;;  %v2584_v38 = vmul.f32 -1.442695, %v1557_v34  ;;  %v2586_v44 = vmul.f32 -1.442695, %v1577_v40 }
 0x5bf   :  { %3282 = vpow2.f32 %v2584_v38 }
 0x5c0   :  { %v1546_v42 = vpop.f32.mrb[14].mxu1  ;;  %3284 = vpow2.f32 %v2585_v41 }
 0x5c1   :  { %v2917_v43 = vpop.f32.mrb[15].mxu1  ;;  %3286 = vpow2.f32 %v2586_v44  ;;  %v1547_v53 = vadd.f32 %v3679_v50, %v1546_v42 }
 0x5c3   :  { %v1593_v56 = vrot.slane %v1547_v53, 1 }
 0x5c7   :  { %v3281_v45 = vpop.eup %3280 }
 0x5c8   :  { %v1564_v46 = vadd.f32 1.0, %v3281_v45 }
 0x5c9   :  { %v3283_v47 = vpop.eup %3282 }
 0x5ca   :  { %v1565_v48 = vadd.f32 1.0, %v3283_v47  ;;  %3288 = vrcp.f32 %v1564_v46  ;;  %v3285_v49 = vpop.eup %3284 }
 0x5cb   :  { %v3287_v51 = vpop.eup %3286  ;;  %v1584_v52 = vadd.f32 1.0, %v3285_v49 }
 0x5cc   :  { %3290 = vrcp.f32 %v1565_v48  ;;  %v1585_v54 = vadd.f32 1.0, %v3287_v51 }
 0x5cd   :  { %3292 = vrcp.f32 %v1584_v52 }
 0x5ce   :  { %3294 = vrcp.f32 %v1585_v54 }
 0x5d4   :  { %v3289_v55 = vpop.eup %3288 }
 0x5d5   :  { %v1596_v57 = vmul.f32 %v3289_v55, %v1547_v53 }
 0x5d6   :  { %v3291_v58 = vpop.eup %3290 }
 0x5d7   :  { %v1597_v60 = vmul.f32 %v3291_v58, %v1593_v56  ;;  %v1598_v61 = vadd.f32 %v1596_v57, %v1590_v59  ;;  %v3293_v2 = vpop.eup %3292  ;;  %v1868_v56 = vld [vmem:[#allocation4 + $0x5] sm:$0x1]  ;;  %v1869_v59 = vld [vmem:[#allocation4 + $0xd] sm:$0x1] }
 0x5d8   :  { %v3295_v3 = vpop.eup %3294  ;;  %v1602_v4 = vsub.f32 1.0, %v3293_v2  ;;  %v1606_v8 = vmul.f32 %v3293_v2, %v3791_v17 }
 0x5d9   :  { %v1599_v63 = vadd.f32 %v1597_v60, %v1591_v62  ;;  %3296 = vtanh.f32 %v1598_v61  ;;  %v1603_v6 = vsub.f32 1.0, %v3295_v3  ;;  %v1607_v11 = vmul.f32 %v3295_v3, %v3793_v18  ;;  %v1828_v18 = vld [vmem:[#allocation2 + $0x5] sm:$0x1] }
 0x5db   :  { %3298 = vtanh.f32 %v1599_v63 }
 0x5e3   :  { %v3297_v5 = vpop.eup %3296 }
 0x5e4   :  { %v1604_v7 = vmul.f32 %v3297_v5, %v1602_v4 }
 0x5e5   :  { %v3299_v9 = vpop.eup %3298 }
 0x5e6   :  { %v1605_v10 = vmul.f32 %v3299_v9, %v1603_v6  ;;  %v3826_v13 = vadd.f32 %v1606_v8, %v1604_v7 }
 0x5e8   :  { %v3828_v15 = vadd.f32 %v1607_v11, %v1605_v10  ;;  %1610 = vst.msk [vmem:[#allocation5 + $0x4] sm:$0x1] %vm496_vm2, %v3826_v13 }
 0x5ea   :  { %1611 = vst.msk [vmem:[#allocation5 + $0xc] sm:$0x1] %vm496_vm2, %v3828_v15  ;;  %v1614_v16 = vrot.slane %v3828_v15, 7 }
 0x5ec   :  { %v1615_v19 = vsel %vm502_vm3, %v1614_v16, %v3826_v13 }
 0x5ed   :  { %2927 = vmatmul.mubr.msk.f32.vlgmr.msra.gmra.mrb[16].mxu0 %vm98_vm1, %v1615_v19  ;;  %2938 = vmatmul.mubr.msk.f32.vlgmr.msra.gmra.mrb[16].mxu1 %vm98_vm1, %v1615_v19 }
 0x5ee   :  { %3140 = vmatpush3.bf16.msra.mxu0 %v3635_v21  ;;  %2948 = vmatprep.mubr.msk.f32.mxu0 %vm3486_vm0, %v3487_v1 }
 0x5ef   :  { %3141 = vmatprep.subr.bf16.mxu0 %v3485_v0  ;;  %3146 = vmatpush3.bf16.msra.mxu1 %v3626_v12 }
 0x5f0   :  { %3147 = vmatprep.subr.bf16.mxu1 %v3485_v0  ;;  %2959 = vmatprep.mubr.msk.f32.mxu1 %vm3486_vm0, %v3487_v1 }
 0x5f2   :  { %3143 = vmatpush3.bf16.msra.mxu0 %v3645_v27 }
 0x5f3   :  { %3150 = vmatprep.subr.bf16.mxu0 %v3485_v0  ;;  %3149 = vmatpush3.bf16.msra.mxu1 %v3629_v14 }
 0x5f4   :  { %3156 = vmatprep.subr.bf16.mxu1 %v3485_v0 }
 0x5f5   :  { %2949 = vmatmul.mubr.msk.f32.vlgmr.msra.gmra.mrb[18].mxu0 %vm98_vm1, %v1615_v19 }
 0x5f6   :  { %3152 = vmatpush3.bf16.msra.mxu0 %v3632_v20  ;;  %2970 = vmatprep.mubr.msk.f32.mxu0 %vm3486_vm0, %v3487_v1 }
 0x5f7   :  { %3153 = vmatprep.subr.bf16.mxu0 %v3485_v0 }
 0x5fa   :  { %3155 = vmatpush3.bf16.msra.mxu0 %v3642_v26 }
 0x5fb   :  { %3162 = vmatprep.subr.bf16.mxu0 %v3485_v0 }
 0x6c0   :  { %v1684_v17 = vpop.f32.mrb[16].mxu0  ;;  %v1754_v24 = vpop.f32.mrb[16].mxu1 }
 0x6c1   :  { %v1831_v22 = vrot.slane %v1684_v17, 1  ;;  %v1834_v23 = vadd.f32 %v1828_v18, %v1684_v17  ;;  %v2928_v30 = vpop.f32.mrb[17].mxu0  ;;  %v2939_v28 = vpop.f32.mrb[17].mxu1  ;;  %v1851_v32 = vrot.slane %v1754_v24, 1  ;;  %v1854_v34 = vadd.f32 %v1848_v33, %v1754_v24  ;;  %v2107_v18 = vld [vmem:[#allocation2 + $0xe] sm:$0x1] }
 0x6c2   :  { %v2126_v30 = vld [vmem:[#allocation3 + $0x6] sm:$0x1] }
 0x6c3   :  { %v1835_v25 = vadd.f32 %v1831_v22, %v1829_v29  ;;  %v2590_v31 = vmul.f32 -1.442695, %v1834_v23  ;;  %v1855_v37 = vadd.f32 %v1851_v32, %v1849_v36  ;;  %v2592_v38 = vmul.f32 -1.442695, %v1854_v34  ;;  %v2127_v29 = vld [vmem:[#allocation3 + $0xe] sm:$0x1] }
 0x6c5   :  { %3300 = vpow2.f32 %v2590_v31  ;;  %v2591_v35 = vmul.f32 -1.442695, %v1835_v25  ;;  %v2593_v41 = vmul.f32 -1.442695, %v1855_v37 }
 0x6c7   :  { %3302 = vpow2.f32 %v2591_v35 }
 0x6c8   :  { %v1824_v39 = vpop.f32.mrb[18].mxu0  ;;  %3304 = vpow2.f32 %v2592_v38 }
 0x6c9   :  { %v2950_v40 = vpop.f32.mrb[19].mxu0  ;;  %3306 = vpow2.f32 %v2593_v41  ;;  %v1825_v49 = vadd.f32 %v3679_v50, %v1824_v39  ;;  %v3895_v41 = vld [vmem:[%s3959_s6] ss:$0 sm:$0xff] }
 0x6cb   :  { %v1871_v53 = vrot.slane %v1825_v49, 1 }
 0x6cf   :  { %v3301_v42 = vpop.eup %3300 }
 0x6d0   :  { %v1842_v43 = vadd.f32 1.0, %v3301_v42 }
 0x6d1   :  { %v3303_v44 = vpop.eup %3302 }
 0x6d2   :  { %v1843_v45 = vadd.f32 1.0, %v3303_v44  ;;  %3308 = vrcp.f32 %v1842_v43  ;;  %v3305_v46 = vpop.eup %3304 }
 0x6d3   :  { %v3307_v47 = vpop.eup %3306  ;;  %v1862_v48 = vadd.f32 1.0, %v3305_v46 }
 0x6d4   :  { %3310 = vrcp.f32 %v1843_v45  ;;  %v1863_v51 = vadd.f32 1.0, %v3307_v47 }
 0x6d5   :  { %3312 = vrcp.f32 %v1862_v48  ;;  %v2146_v48 = vld [vmem:[#allocation4 + $0x6] sm:$0x1] }
 0x6d6   :  { %3314 = vrcp.f32 %v1863_v51 }
 0x6dc   :  { %v3309_v52 = vpop.eup %3308 }
 0x6dd   :  { %v1874_v54 = vmul.f32 %v3309_v52, %v1825_v49  ;;  %v2147_v52 = vld [vmem:[#allocation4 + $0xe] sm:$0x1] }
 0x6de   :  { %v3311_v55 = vpop.eup %3310 }
 0x6df   :  { %v1875_v57 = vmul.f32 %v3311_v55, %v1871_v53  ;;  %v1876_v58 = vadd.f32 %v1874_v54, %v1868_v56  ;;  %v3313_v61 = vpop.eup %3312 }
 0x6e0   :  { %v3315_v62 = vpop.eup %3314  ;;  %v1880_v63 = vsub.f32 1.0, %v3313_v61  ;;  %v1884_v4 = vmul.f32 %v3313_v61, %v3826_v13  ;;  %v2106_v13 = vld [vmem:[#allocation2 + $0x6] sm:$0x1] }
 0x6e1   :  { %v1877_v60 = vadd.f32 %v1875_v57, %v1869_v59  ;;  %3316 = vtanh.f32 %v1876_v58  ;;  %v1881_v3 = vsub.f32 1.0, %v3315_v62  ;;  %v1885_v7 = vmul.f32 %v3315_v62, %v3828_v15 }
 0x6e3   :  { %3318 = vtanh.f32 %v1877_v60 }
 0x6eb   :  { %v3317_v2 = vpop.eup %3316 }
 0x6ec   :  { %v1882_v50 = vmul.f32 %v3317_v2, %v1880_v63 }
 0x6ed   :  { %v3319_v5 = vpop.eup %3318 }
 0x6ee   :  { %v1883_v6 = vmul.f32 %v3319_v5, %v1881_v3  ;;  %v3861_v8 = vadd.f32 %v1884_v4, %v1882_v50  ;;  %v219_v5 = vld [vmem:[%s3960_s7] sm:$0xff] }
 0x6f0   :  { %v3863_v9 = vadd.f32 %v1885_v7, %v1883_v6  ;;  %1888 = vst.msk [vmem:[#allocation5 + $0x5] sm:$0x1] %vm496_vm2, %v3861_v8  ;;  %v220_v6 = vld [vmem:[%s3960_s7 + $0x8] sm:$0xff] }
 0x6f1   :  { %v3180_v7 = vpack.c.bf16 %v220_v6, %v219_v5 }
 0x6f2   :  { %1889 = vst.msk [vmem:[#allocation5 + $0xd] sm:$0x1] %vm496_vm2, %v3863_v9  ;;  %v1892_v10 = vrot.slane %v3863_v9, 7 }
 0x6f4   :  { %v1893_v11 = vsel %vm502_vm3, %v1892_v10, %v3861_v8 }
 0x6f5   :  { %2960 = vmatmul.mubr.msk.f32.vlgmr.msra.gmra.mrb[18].mxu1 %vm98_vm1, %v1893_v11  ;;  %2971 = vmatmul.mubr.msk.f32.vlgmr.msra.gmra.mrb[20].mxu0 %vm98_vm1, %v1893_v11 }
 0x6f6   :  { %3158 = vmatpush3.bf16.msra.mxu1 %v3635_v21  ;;  %2981 = vmatprep.mubr.msk.f32.mxu1 %vm3486_vm0, %v3487_v1 }
 0x6f7   :  { %3159 = vmatprep.subr.bf16.mxu1 %v3485_v0  ;;  %3164 = vmatpush3.bf16.msra.mxu0 %v3626_v12 }
 0x6f8   :  { %3165 = vmatprep.subr.bf16.mxu0 %v3485_v0  ;;  %2992 = vmatprep.mubr.msk.f32.mxu0 %vm3486_vm0, %v3487_v1 }
 0x6fa   :  { %3161 = vmatpush3.bf16.msra.mxu1 %v3645_v27 }
 0x6fb   :  { %3168 = vmatprep.subr.bf16.mxu1 %v3485_v0  ;;  %3167 = vmatpush3.bf16.msra.mxu0 %v3629_v14 }
 0x6fc   :  { %3174 = vmatprep.subr.bf16.mxu0 %v3485_v0 }
 0x6fd   :  { %2982 = vmatmul.mubr.msk.f32.vlgmr.msra.gmra.mrb[20].mxu1 %vm98_vm1, %v1893_v11 }
 0x6fe   :  { %3170 = vmatpush3.bf16.msra.mxu1 %v3632_v20  ;;  %3003 = vmatprep.mubr.msk.f32.mxu1 %vm3486_vm0, %v3487_v1 }
 0x6ff   :  { %3171 = vmatprep.subr.bf16.mxu1 %v3485_v0 }
 0x702   :  { %3173 = vmatpush3.bf16.msra.mxu1 %v3642_v26 }
 0x703   :  { %3181 = vmatprep.subr.bf16.mxu1 %v3180_v7 }
 0x7c8   :  { %v1962_v12 = vpop.f32.mrb[18].mxu1  ;;  %v2032_v15 = vpop.f32.mrb[20].mxu0 }
 0x7c9   :  { %v2109_v16 = vrot.slane %v1962_v12, 1  ;;  %v2112_v19 = vadd.f32 %v2106_v13, %v1962_v12  ;;  %v2961_v17 = vpop.f32.mrb[19].mxu1  ;;  %v2972_v14 = vpop.f32.mrb[21].mxu0  ;;  %v2129_v24 = vrot.slane %v2032_v15, 1  ;;  %v2132_v20 = vadd.f32 %v2126_v30, %v2032_v15  ;;  %v2385_v15 = vld [vmem:[#allocation2 + $0xf] sm:$0x1] }
 0x7ca   :  { %v2404_v14 = vld [vmem:[#allocation3 + $0x7] sm:$0x1] }
 0x7cb   :  { %v2113_v22 = vadd.f32 %v2109_v16, %v2107_v18  ;;  %v2597_v23 = vmul.f32 -1.442695, %v2112_v19  ;;  %v2133_v32 = vadd.f32 %v2129_v24, %v2127_v29  ;;  %v2599_v25 = vmul.f32 -1.442695, %v2132_v20 }
 0x7cd   :  { %3320 = vpow2.f32 %v2597_v23  ;;  %v2598_v28 = vmul.f32 -1.442695, %v2113_v22  ;;  %v2600_v33 = vmul.f32 -1.442695, %v2133_v32  ;;  %v2405_v22 = vld [vmem:[#allocation3 + $0xf] sm:$0x1] }
 0x7cf   :  { %3322 = vpow2.f32 %v2598_v28 }
 0x7d0   :  { %v2102_v26 = vpop.f32.mrb[20].mxu1  ;;  %3324 = vpow2.f32 %v2599_v25 }
 0x7d1   :  { %v2983_v31 = vpop.f32.mrb[21].mxu1  ;;  %3326 = vpow2.f32 %v2600_v33  ;;  %v2103_v42 = vadd.f32 %v3895_v41, %v2102_v26 }
 0x7d3   :  { %v2149_v45 = vrot.slane %v2103_v42, 1 }
 0x7d7   :  { %v3321_v34 = vpop.eup %3320 }
 0x7d8   :  { %v2120_v35 = vadd.f32 1.0, %v3321_v34 }
 0x7d9   :  { %v3323_v36 = vpop.eup %3322 }
 0x7da   :  { %v2121_v37 = vadd.f32 1.0, %v3323_v36  ;;  %3328 = vrcp.f32 %v2120_v35  ;;  %v3325_v38 = vpop.eup %3324 }
 0x7db   :  { %v3327_v39 = vpop.eup %3326  ;;  %v2140_v40 = vadd.f32 1.0, %v3325_v38 }
 0x7dc   :  { %3330 = vrcp.f32 %v2121_v37  ;;  %v2141_v43 = vadd.f32 1.0, %v3327_v39 }
 0x7dd   :  { %3332 = vrcp.f32 %v2140_v40 }
 0x7de   :  { %3334 = vrcp.f32 %v2141_v43  ;;  %v2424_v43 = vld [vmem:[#allocation4 + $0x7] sm:$0x1] }
 0x7e4   :  { %v3329_v44 = vpop.eup %3328 }
 0x7e5   :  { %v2152_v46 = vmul.f32 %v3329_v44, %v2103_v42 }
 0x7e6   :  { %v3331_v47 = vpop.eup %3330 }
 0x7e7   :  { %v2153_v49 = vmul.f32 %v3331_v47, %v2149_v45  ;;  %v2154_v51 = vadd.f32 %v2152_v46, %v2146_v48  ;;  %v3333_v54 = vpop.eup %3332  ;;  %v2425_v46 = vld [vmem:[#allocation4 + $0xf] sm:$0x1] }
 0x7e8   :  { %v3335_v55 = vpop.eup %3334  ;;  %v2158_v56 = vsub.f32 1.0, %v3333_v54  ;;  %v2162_v60 = vmul.f32 %v3333_v54, %v3861_v8  ;;  %v2384_v8 = vld [vmem:[#allocation2 + $0x7] sm:$0x1] }
 0x7e9   :  { %v2155_v53 = vadd.f32 %v2153_v49, %v2147_v52  ;;  %3336 = vtanh.f32 %v2154_v51  ;;  %v2159_v58 = vsub.f32 1.0, %v3335_v55  ;;  %v2163_v63 = vmul.f32 %v3335_v55, %v3863_v9 }
 0x7eb   :  { %3338 = vtanh.f32 %v2155_v53 }
 0x7f3   :  { %v3337_v57 = vpop.eup %3336 }
 0x7f4   :  { %v2160_v59 = vmul.f32 %v3337_v57, %v2158_v56 }
 0x7f5   :  { %v3339_v61 = vpop.eup %3338 }
 0x7f6   :  { %v2161_v62 = vmul.f32 %v3339_v61, %v2159_v58  ;;  %v3900_v2 = vadd.f32 %v2162_v60, %v2160_v59 }
 0x7f8   :  { %v3902_v3 = vadd.f32 %v2163_v63, %v2161_v62  ;;  %2166 = vst.msk [vmem:[#allocation5 + $0x6] sm:$0x1] %vm496_vm2, %v3900_v2 }
 0x7fa   :  { %2167 = vst.msk [vmem:[#allocation5 + $0xe] sm:$0x1] %vm496_vm2, %v3902_v3  ;;  %v2170_v50 = vrot.slane %v3902_v3, 7 }
 0x7fc   :  { %v2171_v4 = vsel %vm502_vm3, %v2170_v50, %v3900_v2 }
 0x7fd   :  { %2993 = vmatmul.mubr.msk.f32.vlgmr.msra.gmra.mrb[22].mxu0 %vm98_vm1, %v2171_v4  ;;  %3004 = vmatmul.mubr.msk.f32.vlgmr.msra.gmra.mrb[22].mxu1 %vm98_vm1, %v2171_v4 }
 0x7fe   :  { %3176 = vmatpush3.bf16.msra.mxu0 %v3635_v21  ;;  %3014 = vmatprep.mubr.msk.f32.mxu0 %vm3486_vm0, %v3487_v1  ;;  %v221_v21 = vld [vmem:[%s3960_s7 + $0x10] sm:$0xff] }
 0x7ff   :  { %3177 = vmatprep.subr.bf16.mxu0 %v3485_v0  ;;  %v222_v0 = vld [vmem:[%s3960_s7 + $0x18] sm:$0xff]  ;;  %3183 = vmatpush3.bf16.msra.mxu1 %v3180_v7  ;;  %s3490_s7 = smov [#allocation14]  }
 0x800   :  { %v3184_v1 = vpack.c.bf16 %v222_v0, %v221_v21  ;;  %s2537_s28 = sshll.u32 %s3490_s7, 4  ;;  %s2538_s28 = int_to_ptr.vmem [resolvable:$true] %s2537_s28 }
 0x801   :  { %s3449_s4 = scalar_lea.vmem %s2538_s28, 256  ;;  %p3454_p5 = scmp.lt.s32.totalorder %s2538_s28, %s2538_s28 }
 0x802   :  { %3179 = vmatpush3.bf16.msra.mxu0 %v3645_v27  ;;  %3185 = vmatprep.subr.bf16.mxu1 %v3184_v1  ;;  %p3450_p4 = scmp.ne.s32.totalorder %s2538_s28, %s3449_s4  ;;  %p3455_p6 = scmp.lt.s32.totalorder %s3449_s4, %s3449_s4 }
 0x803   :  { %3187 = vmatpush3.bf16.msra.mxu1 %v3184_v1 }
 0x804   :  { %p3456_p7 = por %p3455_p6, %p3454_p5 }
 0x805   :  { %3015 = vmatmul.mubr.msk.f32.vlgmr.msra.gmra.mrb[24].mxu0 %vm98_vm1, %v2171_v4 }
 0x806   :  { %p3457_p8 = pnand %p3456_p7, %p3450_p4 }
 0x8d0   :  { %v2240_v27 = vpop.f32.mrb[22].mxu0  ;;  %v2310_v9 = vpop.f32.mrb[22].mxu1 }
 0x8d1   :  { %v2387_v10 = vrot.slane %v2240_v27, 1  ;;  %v2390_v11 = vadd.f32 %v2384_v8, %v2240_v27  ;;  %v2994_v12 = vpop.f32.mrb[23].mxu0  ;;  %v3005_v13 = vpop.f32.mrb[23].mxu1  ;;  %v2407_v16 = vrot.slane %v2310_v9, 1  ;;  %v2410_v18 = vadd.f32 %v2404_v14, %v2310_v9 }
 0x8d3   :  { %v2391_v19 = vadd.f32 %v2387_v10, %v2385_v15  ;;  %v2604_v17 = vmul.f32 -1.442695, %v2390_v11  ;;  %v2411_v23 = vadd.f32 %v2407_v16, %v2405_v22  ;;  %v2606_v30 = vmul.f32 -1.442695, %v2410_v18 }
 0x8d5   :  { %3340 = vpow2.f32 %v2604_v17  ;;  %v2605_v24 = vmul.f32 -1.442695, %v2391_v19  ;;  %v2607_v29 = vmul.f32 -1.442695, %v2411_v23 }
 0x8d7   :  { %3342 = vpow2.f32 %v2605_v24 }
 0x8d8   :  { %v2380_v20 = vpop.f32.mrb[24].mxu0  ;;  %3344 = vpow2.f32 %v2606_v30 }
 0x8d9   :  { %v3016_v28 = vpop.f32.mrb[25].mxu0  ;;  %3346 = vpow2.f32 %v2607_v29  ;;  %v2381_v36 = vadd.f32 %v3895_v41, %v2380_v20 }
 0x8db   :  { %v2427_v39 = vrot.slane %v2381_v36, 1 }
 0x8df   :  { %v3341_v32 = vpop.eup %3340 }
 0x8e0   :  { %v2398_v25 = vadd.f32 1.0, %v3341_v32 }
 0x8e1   :  { %v3343_v26 = vpop.eup %3342 }
 0x8e2   :  { %v2399_v31 = vadd.f32 1.0, %v3343_v26  ;;  %3348 = vrcp.f32 %v2398_v25  ;;  %v3345_v33 = vpop.eup %3344 }
 0x8e3   :  { %v3347_v34 = vpop.eup %3346  ;;  %v2418_v35 = vadd.f32 1.0, %v3345_v33 }
 0x8e4   :  { %3350 = vrcp.f32 %v2399_v31  ;;  %v2419_v37 = vadd.f32 1.0, %v3347_v34 }
 0x8e5   :  { %3352 = vrcp.f32 %v2418_v35 }
 0x8e6   :  { %3354 = vrcp.f32 %v2419_v37 }
 0x8ec   :  { %v3349_v38 = vpop.eup %3348 }
 0x8ed   :  { %v2430_v40 = vmul.f32 %v3349_v38, %v2381_v36 }
 0x8ee   :  { %v3351_v42 = vpop.eup %3350 }
 0x8ef   :  { %v2431_v44 = vmul.f32 %v3351_v42, %v2427_v39  ;;  %v2432_v45 = vadd.f32 %v2430_v40, %v2424_v43  ;;  %v3353_v48 = vpop.eup %3352 }
 0x8f0   :  { %v3355_v49 = vpop.eup %3354  ;;  %v2436_v51 = vsub.f32 1.0, %v3353_v48  ;;  %v2440_v41 = vmul.f32 %v3353_v48, %v3900_v2 }
 0x8f1   :  { %v2433_v47 = vadd.f32 %v2431_v44, %v2425_v46  ;;  %3356 = vtanh.f32 %v2432_v45  ;;  %v2437_v53 = vsub.f32 1.0, %v3355_v49  ;;  %v2441_v56 = vmul.f32 %v3355_v49, %v3902_v3 }
 0x8f3   :  { %3358 = vtanh.f32 %v2433_v47 }
 0x8fb   :  { %v3357_v52 = vpop.eup %3356 }
 0x8fc   :  { %v2438_v54 = vmul.f32 %v3357_v52, %v2436_v51 }
 0x8fd   :  { %v3359_v55 = vpop.eup %3358 }
 0x8fe   :  { %v2439_v57 = vmul.f32 %v3359_v55, %v2437_v53  ;;  %v2442_v58 = vadd.f32 %v2440_v41, %v2438_v54 }
 0x900   :  { %v2443_v59 = vadd.f32 %v2441_v56, %v2439_v57  ;;  %2444 = vst.msk [vmem:[#allocation5 + $0x7] sm:$0x1] %vm496_vm2, %v2442_v58 }
 0x902   :  { %2445 = vst.msk [vmem:[#allocation5 + $0xf] sm:$0x1] %vm496_vm2, %v2443_v59 }
 0x907   :  { %v2446_v60 = vld [vmem:[#allocation5] sm:$0xff] }
 0x908   :  { %3025 = vmatprep.mubr.msk.f32.mxu1 %vm98_vm1, %v2446_v60 }
 0x909   :  { %v2447_v61 = vld [vmem:[#allocation5 + $0x8] sm:$0xff] }
 0x90a   :  { %3026 = vmatmul.mubr.msk.f32.vlgmr.msra.gmra.mrb[24].mxu1 %vm98_vm1, %v2447_v61 }
 0x9dd   :  { %v3027_v62 = vpop.f32.mrb[24].mxu1 }
 0x9de   :  { %2531 = vst.msk [vmem:[#allocation14 + $0x8] sm:$0xff] %vm2529_vm4, %v3027_v62  ;;  %v2520_v63 = vpop.f32.mrb[25].mxu1 }
 0x9df   :  { %2530 = vst.msk [vmem:[#allocation14] sm:$0xff] %vm2529_vm4, %v2520_v63 }
 0x9e0   :  { %3460 = shalt.err (!%p3457_p8)
}
 0x9e1   :  { %s3461_s11 = scalar_lea.hbm %s3961_s8, 256 }
 0x9e2   :  { %p3462_p9 = scmp.ne.s32.totalorder %s3961_s8, %s3461_s11  ;;  %p3465_p10 = scmp.lt.u32.totalorder %s3461_s11, %s3961_s8 }
 0x9e4   :  { %p3467_p11 = pnand %p3465_p10, %p3462_p9 }
 0x9e6   :  { %3470 = shalt.err (!%p3467_p11)
}
 0x9e7   :  { %2543 = dma.vmem_to_hbm [thread:$0]  %s2538_s28, 256, %s3961_s8, [#allocation8], %s3481_s17, %s3481_s17, %s3482_s18  }
 0x9e8   :  { %3477 = dma.done.wait [#allocation8], 256  }
 0x9e9   :  { %3478 = vsyncadd [#allocation8], 4294967040 }
 0x9ea   :  { %2547 = vsyncpa [#allocation7], 1 }
 0x9eb   :  { %2548 = vsyncpa [#allocation10], 1 }
 0x9ec   :  { %2549 = vsyncpa [#allocation13], 1 }
 0x9ed   :  { %2550 = vsyncpa [#allocation8], 1 }

</bundles_post_ra>
